<compile_context>
chip_gen: v5e
topology: v5e:2x2
jax: 0.10.0
libtpu: 0.0.40
codegen_flags: <defaults>
</compile_context>

<pallas_src>
import jax
import jax.numpy as jnp
from jax.experimental import pallas as pl
from jax.experimental.pallas import tpu as pltpu

LANE = 128      # lane width == padded latent width == fused head width
LV_OFF = 64     # lane offset of log_var inside the fused 128-lane head


def _round_up(n, m):
    return ((n + m - 1) // m) * m


def _plan_dims(input_dim, latent_dim):
    """Static lane-layout plan: padded x width, x_rec width, eps lane offset/shift."""
    assert latent_dim <= LV_OFF, (
        "fused 128-lane mu|log_var head requires latent_dim <= 64")
    # TODO(synk): support latent_dim > 64 (fall back to a 2*128-lane head).
    in_pad = _round_up(input_dim, LANE)
    rem = input_dim - (in_pad - LANE)       # x lanes used in its last 128-group
    if rem <= LV_OFF:
        # eps at the half-way lane of x's last 128-group; in-kernel roll by 64
        # (= half width, direction-agnostic) aligns it with the mu lanes.
        eps_off, eps_shift = (in_pad - LANE) + LV_OFF, LV_OFF
    else:
        # x's last group is too full: give eps its own trailing 128-lane group
        # (already aligned, no roll needed).
        in_pad += LANE
        eps_off, eps_shift = in_pad - LANE, 0
    out_pad = _round_up(input_dim, LANE)    # x_rec width (independent of eps group)
    return in_pad, out_pad, eps_off, eps_shift


def _make_vae_kernel(in_pad, eps_shift):
    def vae_kernel(x_ref,
                   w1_ref, b1_ref, w2_ref, b2_ref, wh_ref, bh_ref,
                   wd1_ref, bd1_ref, wd2_ref, bd2_ref, wd3_ref, bd3_ref,
                   xrec_ref, head_ref, z_ref):
        x = x_ref[...]                                   # f32, eps packed in padding lanes

        # ---- encoder: Linear -> ReLU -> (Dropout p=0 == identity), twice ----
        h = jnp.dot(x.astype(jnp.bfloat16), w1_ref[...],
                    preferred_element_type=jnp.float32) + b1_ref[...]
        h = jnp.maximum(h, 0.0)
        h = jnp.dot(h.astype(jnp.bfloat16), w2_ref[...],
                    preferred_element_type=jnp.float32) + b2_ref[...]
        h = jnp.maximum(h, 0.0)

        # ---- fused latent head: mu in lanes [0,64), log_var in lanes [64,128) ----
        head = jnp.dot(h.astype(jnp.bfloat16), wh_ref[...],
                       preferred_element_type=jnp.float32) + bh_ref[...]
        head_ref[...] = head                             # lane-dense f32 store
        lv = pltpu.roll(head, shift=LV_OFF, axis=1)      # log_var lanes -> mu lanes (XLU)

        # ---- eps: packed in x's padding lanes; align with the mu lanes ----
        xe = x if in_pad == LANE else x[:, in_pad - LANE:]
        eps = pltpu.roll(xe, shift=eps_shift, axis=1) if eps_shift else xe

        # ---- reparameterize: z = sigmoid(mu + eps * exp(0.5 * log_var)) ----
        z = jax.nn.sigmoid(head + eps * jnp.exp(0.5 * lv))
        z_ref[...] = z                                   # lane-dense store

        # ---- decoder: Linear -> ReLU (x2) -> final Linear ----
        # (garbage lanes of z hit zero rows of wd1p -> contribute nothing)
        d = jnp.dot(z.astype(jnp.bfloat16), wd1_ref[...],
                    preferred_element_type=jnp.float32) + bd1_ref[...]
        d = jnp.maximum(d, 0.0)
        d = jnp.dot(d.astype(jnp.bfloat16), wd2_ref[...],
                    preferred_element_type=jnp.float32) + bd2_ref[...]
        d = jnp.maximum(d, 0.0)
        xrec_ref[...] = (jnp.dot(d.astype(jnp.bfloat16), wd3_ref[...],
                                 preferred_element_type=jnp.float32) + bd3_ref[...])
    return vae_kernel


def _linear_params(key, in_dim, out_dim):
    """PyTorch-style uniform(-1/sqrt(fan_in), 1/sqrt(fan_in)) init, deterministic."""
    kw, kb = jax.random.split(key)
    bound = 1.0 / jnp.sqrt(jnp.float32(in_dim))
    # Stored already transposed to (in, out) for y = x @ W + b; bias as (1, out).
    w = jax.random.uniform(kw, (in_dim, out_dim), jnp.float32, -bound, bound)
    b = jax.random.uniform(kb, (1, out_dim), jnp.float32, -bound, bound)
    return w, b


def init_vae_params(key, input_dim, hidden_dim=(128, 64), latent_dim=5):
    keys = jax.random.split(key, 7)
    w1, b1 = _linear_params(keys[0], input_dim, hidden_dim[0])
    w2, b2 = _linear_params(keys[1], hidden_dim[0], hidden_dim[1])
    wmu, bmu = _linear_params(keys[2], hidden_dim[1], latent_dim)
    wlv, blv = _linear_params(keys[3], hidden_dim[1], latent_dim)
    wd1, bd1 = _linear_params(keys[4], latent_dim, hidden_dim[1])
    wd2, bd2 = _linear_params(keys[5], hidden_dim[1], hidden_dim[0])
    wd3, bd3 = _linear_params(keys[6], hidden_dim[0], input_dim)
    return (w1, b1, w2, b2, wmu, bmu, wlv, blv,
            wd1, bd1, wd2, bd2, wd3, bd3)


def pack_vae_params(params, input_dim, latent_dim):
    """One-time repack into the kernel layout: bf16 weights, lane-padded input /
    output / latent dims, and the fused single-128-lane mu|log_var head."""
    (w1, b1, w2, b2, wmu, bmu, wlv, blv,
     wd1, bd1, wd2, bd2, wd3, bd3) = params
    in_pad, out_pad, _, _ = _plan_dims(input_dim, latent_dim)
    h1 = w1.shape[1]
    h2 = w2.shape[1]
    bf = jnp.bfloat16

    # Encoder input weight zero-padded to in_pad rows (eps lanes hit zero rows).
    w1p = jnp.zeros((in_pad, h1), bf).at[:input_dim, :].set(w1.astype(bf))

    # Fused head: mu -> lanes [0, latent), log_var -> lanes [64, 64+latent).
    wh = jnp.zeros((h2, LANE), bf)
    wh = wh.at[:, :latent_dim].set(wmu.astype(bf))
    wh = wh.at[:, LV_OFF:LV_OFF + latent_dim].set(wlv.astype(bf))
    bh = jnp.zeros((1, LANE), jnp.float32)
    bh = bh.at[:, :latent_dim].set(bmu)
    bh = bh.at[:, LV_OFF:LV_OFF + latent_dim].set(blv)

    wd1p = jnp.zeros((LANE, h2), bf).at[:latent_dim, :].set(wd1.astype(bf))
    wd3p = jnp.zeros((h1, out_pad), bf).at[:, :input_dim].set(wd3.astype(bf))
    bd3p = jnp.zeros((1, out_pad), jnp.float32).at[:, :input_dim].set(bd3)

    return (w1p, b1, w2.astype(bf), b2, wh, bh,
            wd1p, bd1, wd2.astype(bf), bd2, wd3p, bd3p)


def vae_forward(x, eps, kparams, *, tile_b=1024):
    """Full VAE forward in one gridded Pallas kernel.

    x:       (B, input_dim) float32
    eps:     (B, latent_dim) float32  (the randn_like draw for reparameterize)
    kparams: output of pack_vae_params
    returns (x_reconstructed, mu, log_var, z)
    """
    B, input_dim = x.shape
    latent_dim = eps.shape[1]
    in_pad, out_pad, eps_off, eps_shift = _plan_dims(input_dim, latent_dim)
    assert kparams[0].shape[0] == in_pad, "kparams packed for a different input_dim"

    # Adaptive batch tiling: don't round B up to a mostly-empty extra tile, and
    # keep >= 4 grid steps when the batch allows it (v7x megacore / pipelining).
    n_steps = max(1, pl.cdiv(B, tile_b))
    n_steps = max(n_steps, min(4, pl.cdiv(B, 8)))
    tb = _round_up(pl.cdiv(B, n_steps), 8)
    n_steps = pl.cdiv(B, tb)
    b_pad = n_steps * tb

    # Pack eps into x's zero-padding lanes -> a single input stream; pad with
    # jnp.pad/concatenate (no full zero-array + scatter pass).
    xw = jnp.pad(x, ((0, 0), (0, eps_off - input_dim)))
    xw = jnp.concatenate([xw, eps], axis=1)
    xp = jnp.pad(xw, ((0, b_pad - B), (0, in_pad - eps_off - latent_dim)))

    def batch_spec(width):
        return pl.BlockSpec((tb, width), lambda i: (i, 0))

    def resident_spec(shape):
        nd = len(shape)
        return pl.BlockSpec(shape, lambda i: (0,) * nd)

    in_specs = [batch_spec(in_pad)] + [resident_spec(p.shape) for p in kparams]
    out_specs = (batch_spec(out_pad), batch_spec(LANE), batch_spec(LANE))
    out_shape = (
        jax.ShapeDtypeStruct((b_pad, out_pad), jnp.float32),   # x_rec (padded)
        jax.ShapeDtypeStruct((b_pad, LANE), jnp.float32),      # [mu | log_var] head
        jax.ShapeDtypeStruct((b_pad, LANE), jnp.float32),      # z (padded)
    )

    xrec_p, head_p, z_p = pl.pallas_call(
        _make_vae_kernel(in_pad, eps_shift),
        grid=(n_steps,),
        out_shape=out_shape,
        in_specs=in_specs,
        out_specs=out_specs,
        compiler_params=pltpu.CompilerParams(
            dimension_semantics=("parallel",),       # megacore-shardable on v7x
            vmem_limit_bytes=48 * 1024 * 1024,       # headroom, still < v7x 64 MiB/TC
        ),
    )(xp, *kparams)

    x_rec = xrec_p[:B, :input_dim]
    mu = head_p[:B, :latent_dim]
    log_var = head_p[:B, LV_OFF:LV_OFF + latent_dim]
    z = z_p[:B, :latent_dim]
    return x_rec, mu, log_var, z


def vae_forward_ref(x, eps, params, *, matmul_dtype=jnp.float32):
    """Pure-JAX reference (unpadded, unfused).  Pass matmul_dtype=jnp.bfloat16 to
    mirror the kernel's bf16-operand / f32-accumulation MXU path."""
    (w1, b1, w2, b2, wmu, bmu, wlv, blv,
     wd1, bd1, wd2, bd2, wd3, bd3) = params

    def mm(a, w):
        return jnp.dot(a.astype(matmul_dtype), w.astype(matmul_dtype),
                       preferred_element_type=jnp.float32)

    h = jnp.maximum(mm(x, w1) + b1, 0.0)
    h = jnp.maximum(mm(h, w2) + b2, 0.0)
    mu = mm(h, wmu) + bmu
    log_var = mm(h, wlv) + blv
    z = jax.nn.sigmoid(mu + eps * jnp.exp(0.5 * log_var))
    d = jnp.maximum(mm(z, wd1) + bd1, 0.0)
    d = jnp.maximum(mm(d, wd2) + bd2, 0.0)
    x_rec = mm(d, wd3) + bd3
    return x_rec, mu, log_var, z


if __name__ == "__main__":
    # Small deterministic example consistent with module defaults; B chosen so
    # the grid has multiple steps and exercises the batch-padding path.
    B = 260
    INPUT_DIM = 32
    HIDDEN = (128, 64)
    LATENT = 5

    root = jax.random.PRNGKey(0)
    k_x, k_eps, k_params = jax.random.split(root, 3)

    x = jax.random.normal(k_x, (B, INPUT_DIM), jnp.float32)
    eps = jax.random.normal(k_eps, (B, LATENT), jnp.float32)

    params = init_vae_params(k_params, INPUT_DIM, HIDDEN, LATENT)
    kparams = pack_vae_params(params, INPUT_DIM, LATENT)

    outs = vae_forward(x, eps, kparams, tile_b=1024)
    outs = jax.block_until_ready(outs)

    # Compare against a reference using the same bf16-operand matmuls (an
    # all-f32 reference cannot match the bf16 MXU path at 1e-4).  mu/log_var
    # are checked tightly; z/x_rec slightly looser (they pass through an extra
    # bf16 rounding of z inside the kernel).
    refs = vae_forward_ref(x, eps, params, matmul_dtype=jnp.bfloat16)
    tols = (1e-2, 2e-3, 2e-3, 1e-2)   # x_rec, mu, log_var, z
    for got, want, tol in zip(outs, refs, tols):
        assert got.shape == want.shape and got.dtype == want.dtype
        assert jnp.allclose(got, want, atol=tol, rtol=tol), "mismatch vs reference"

    print("KERNEL_OK")
</pallas_src>

<mosaic_0001>
module attributes {stable_mosaic.version = 11 : i64} {
  func.func @vae_kernel(%arg0: i32, %arg1: memref<72x128xf32, #tpu.memory_space<vmem>>, %arg2: memref<128x128xbf16, #tpu.memory_space<vmem>>, %arg3: memref<1x128xf32, #tpu.memory_space<vmem>>, %arg4: memref<128x64xbf16, #tpu.memory_space<vmem>>, %arg5: memref<1x64xf32, #tpu.memory_space<vmem>>, %arg6: memref<64x128xbf16, #tpu.memory_space<vmem>>, %arg7: memref<1x128xf32, #tpu.memory_space<vmem>>, %arg8: memref<128x64xbf16, #tpu.memory_space<vmem>>, %arg9: memref<1x64xf32, #tpu.memory_space<vmem>>, %arg10: memref<64x128xbf16, #tpu.memory_space<vmem>>, %arg11: memref<1x128xf32, #tpu.memory_space<vmem>>, %arg12: memref<128x128xbf16, #tpu.memory_space<vmem>>, %arg13: memref<1x128xf32, #tpu.memory_space<vmem>>, %arg14: memref<72x128xf32, #tpu.memory_space<vmem>>, %arg15: memref<72x128xf32, #tpu.memory_space<vmem>>, %arg16: memref<72x128xf32, #tpu.memory_space<vmem>>) attributes {dimension_semantics = [#tpu.dimension_semantics<parallel>], iteration_bounds = array<i64: 4>, scalar_prefetch = 0 : i64, scratch_operands = 0 : i64, tpu.core_type = #tpu.core_type<tc>, window_params = [{transform_indices = @transform_0, window_bounds = array<i64: 72, 128>}, {pipeline_mode = #tpu.pipeline_mode<synchronous>, transform_indices = @transform_1, window_bounds = array<i64: 128, 128>}, {pipeline_mode = #tpu.pipeline_mode<synchronous>, transform_indices = @transform_2, window_bounds = array<i64: 1, 128>}, {pipeline_mode = #tpu.pipeline_mode<synchronous>, transform_indices = @transform_3, window_bounds = array<i64: 128, 64>}, {pipeline_mode = #tpu.pipeline_mode<synchronous>, transform_indices = @transform_4, window_bounds = array<i64: 1, 64>}, {pipeline_mode = #tpu.pipeline_mode<synchronous>, transform_indices = @transform_5, window_bounds = array<i64: 64, 128>}, {pipeline_mode = #tpu.pipeline_mode<synchronous>, transform_indices = @transform_6, window_bounds = array<i64: 1, 128>}, {pipeline_mode = #tpu.pipeline_mode<synchronous>, transform_indices = @transform_7, window_bounds = array<i64: 128, 64>}, {pipeline_mode = #tpu.pipeline_mode<synchronous>, transform_indices = @transform_8, window_bounds = array<i64: 1, 64>}, {pipeline_mode = #tpu.pipeline_mode<synchronous>, transform_indices = @transform_9, window_bounds = array<i64: 64, 128>}, {pipeline_mode = #tpu.pipeline_mode<synchronous>, transform_indices = @transform_10, window_bounds = array<i64: 1, 128>}, {pipeline_mode = #tpu.pipeline_mode<synchronous>, transform_indices = @transform_11, window_bounds = array<i64: 128, 128>}, {pipeline_mode = #tpu.pipeline_mode<synchronous>, transform_indices = @transform_12, window_bounds = array<i64: 1, 128>}, {transform_indices = @transform_13, window_bounds = array<i64: 72, 128>}, {transform_indices = @transform_14, window_bounds = array<i64: 72, 128>}, {transform_indices = @transform_15, window_bounds = array<i64: 72, 128>}]} {
    %c0 = arith.constant 0 : index
    %c0_0 = arith.constant 0 : index
    %0 = vector.load %arg1[%c0, %c0_0] : memref<72x128xf32, #tpu.memory_space<vmem>>, vector<72x128xf32>
    %1 = arith.truncf %0 : vector<72x128xf32> to vector<72x128xbf16>
    %c0_1 = arith.constant 0 : index
    %c0_2 = arith.constant 0 : index
    %2 = vector.load %arg2[%c0_1, %c0_2] : memref<128x128xbf16, #tpu.memory_space<vmem>>, vector<128x128xbf16>
    %cst = arith.constant dense<0.000000e+00> : vector<72x128xf32>
    %3 = tpu.matmul %1, %2, %cst {dimension_numbers = #tpu.dot_dimension_numbers<[1], [0], [0], [1], [0, 0, 1, 1], [], []>} : vector<72x128xbf16>, vector<128x128xbf16>, vector<72x128xf32> -> vector<72x128xf32>
    %c0_3 = arith.constant 0 : index
    %c0_4 = arith.constant 0 : index
    %4 = vector.load %arg3[%c0_3, %c0_4] : memref<1x128xf32, #tpu.memory_space<vmem>>, vector<1x128xf32>
    %5 = vector.broadcast %4 : vector<1x128xf32> to vector<72x128xf32>
    %6 = arith.addf %3, %5 : vector<72x128xf32>
    %cst_5 = arith.constant 0.000000e+00 : f32
    %7 = vector.broadcast %cst_5 : f32 to vector<72x128xf32>
    %8 = arith.maximumf %6, %7 : vector<72x128xf32>
    %9 = arith.truncf %8 : vector<72x128xf32> to vector<72x128xbf16>
    %c0_6 = arith.constant 0 : index
    %c0_7 = arith.constant 0 : index
    %10 = vector.load %arg4[%c0_6, %c0_7] : memref<128x64xbf16, #tpu.memory_space<vmem>>, vector<128x64xbf16>
    %cst_8 = arith.constant dense<0.000000e+00> : vector<72x64xf32>
    %11 = tpu.matmul %9, %10, %cst_8 {dimension_numbers = #tpu.dot_dimension_numbers<[1], [0], [0], [1], [0, 0, 1, 1], [], []>} : vector<72x128xbf16>, vector<128x64xbf16>, vector<72x64xf32> -> vector<72x64xf32>
    %c0_9 = arith.constant 0 : index
    %c0_10 = arith.constant 0 : index
    %12 = vector.load %arg5[%c0_9, %c0_10] : memref<1x64xf32, #tpu.memory_space<vmem>>, vector<1x64xf32>
    %13 = vector.broadcast %12 : vector<1x64xf32> to vector<72x64xf32>
    %14 = arith.addf %11, %13 : vector<72x64xf32>
    %cst_11 = arith.constant 0.000000e+00 : f32
    %15 = vector.broadcast %cst_11 : f32 to vector<72x64xf32>
    %16 = arith.maximumf %14, %15 : vector<72x64xf32>
    %17 = arith.truncf %16 : vector<72x64xf32> to vector<72x64xbf16>
    %c0_12 = arith.constant 0 : index
    %c0_13 = arith.constant 0 : index
    %18 = vector.load %arg6[%c0_12, %c0_13] : memref<64x128xbf16, #tpu.memory_space<vmem>>, vector<64x128xbf16>
    %cst_14 = arith.constant dense<0.000000e+00> : vector<72x128xf32>
    %19 = tpu.matmul %17, %18, %cst_14 {dimension_numbers = #tpu.dot_dimension_numbers<[1], [0], [0], [1], [0, 0, 1, 1], [], []>} : vector<72x64xbf16>, vector<64x128xbf16>, vector<72x128xf32> -> vector<72x128xf32>
    %c0_15 = arith.constant 0 : index
    %c0_16 = arith.constant 0 : index
    %20 = vector.load %arg7[%c0_15, %c0_16] : memref<1x128xf32, #tpu.memory_space<vmem>>, vector<1x128xf32>
    %21 = vector.broadcast %20 : vector<1x128xf32> to vector<72x128xf32>
    %22 = arith.addf %19, %21 : vector<72x128xf32>
    %c0_17 = arith.constant 0 : index
    %c0_18 = arith.constant 0 : index
    %23 = vector.load %arg15[%c0_17, %c0_18] : memref<72x128xf32, #tpu.memory_space<vmem>>, vector<72x128xf32>
    tpu.vector_store %arg15[%c0_17, %c0_18], %22 {strides = array<i32>} : memref<72x128xf32, #tpu.memory_space<vmem>>, vector<72x128xf32>,
    %c64_i32 = arith.constant 64 : i32
    %24 = tpu.dynamic_rotate %22 by %c64_i32 dim 1 : vector<72x128xf32>, i32 -> vector<72x128xf32>
    %c64_i32_19 = arith.constant 64 : i32
    %25 = tpu.dynamic_rotate %0 by %c64_i32_19 dim 1 : vector<72x128xf32>, i32 -> vector<72x128xf32>
    %cst_20 = arith.constant 5.000000e-01 : f32
    %26 = vector.broadcast %cst_20 : f32 to vector<72x128xf32>
    %27 = arith.mulf %26, %24 : vector<72x128xf32>
    %28 = math.exp %27 : vector<72x128xf32>
    %29 = arith.mulf %25, %28 : vector<72x128xf32>
    %30 = arith.addf %22, %29 : vector<72x128xf32>
    %31 = arith.negf %30 : vector<72x128xf32>
    %32 = math.exp %31 : vector<72x128xf32>
    %cst_21 = arith.constant 1.000000e+00 : f32
    %33 = vector.broadcast %cst_21 : f32 to vector<72x128xf32>
    %34 = arith.addf %33, %32 : vector<72x128xf32>
    %35 = arith.divf %33, %34 : vector<72x128xf32>
    %c0_22 = arith.constant 0 : index
    %c0_23 = arith.constant 0 : index
    %36 = vector.load %arg16[%c0_22, %c0_23] : memref<72x128xf32, #tpu.memory_space<vmem>>, vector<72x128xf32>
    tpu.vector_store %arg16[%c0_22, %c0_23], %35 {strides = array<i32>} : memref<72x128xf32, #tpu.memory_space<vmem>>, vector<72x128xf32>,
    %37 = arith.truncf %35 : vector<72x128xf32> to vector<72x128xbf16>
    %c0_24 = arith.constant 0 : index
    %c0_25 = arith.constant 0 : index
    %38 = vector.load %arg8[%c0_24, %c0_25] : memref<128x64xbf16, #tpu.memory_space<vmem>>, vector<128x64xbf16>
    %cst_26 = arith.constant dense<0.000000e+00> : vector<72x64xf32>
    %39 = tpu.matmul %37, %38, %cst_26 {dimension_numbers = #tpu.dot_dimension_numbers<[1], [0], [0], [1], [0, 0, 1, 1], [], []>} : vector<72x128xbf16>, vector<128x64xbf16>, vector<72x64xf32> -> vector<72x64xf32>
    %c0_27 = arith.constant 0 : index
    %c0_28 = arith.constant 0 : index
    %40 = vector.load %arg9[%c0_27, %c0_28] : memref<1x64xf32, #tpu.memory_space<vmem>>, vector<1x64xf32>
    %41 = vector.broadcast %40 : vector<1x64xf32> to vector<72x64xf32>
    %42 = arith.addf %39, %41 : vector<72x64xf32>
    %cst_29 = arith.constant 0.000000e+00 : f32
    %43 = vector.broadcast %cst_29 : f32 to vector<72x64xf32>
    %44 = arith.maximumf %42, %43 : vector<72x64xf32>
    %45 = arith.truncf %44 : vector<72x64xf32> to vector<72x64xbf16>
    %c0_30 = arith.constant 0 : index
    %c0_31 = arith.constant 0 : index
    %46 = vector.load %arg10[%c0_30, %c0_31] : memref<64x128xbf16, #tpu.memory_space<vmem>>, vector<64x128xbf16>
    %cst_32 = arith.constant dense<0.000000e+00> : vector<72x128xf32>
    %47 = tpu.matmul %45, %46, %cst_32 {dimension_numbers = #tpu.dot_dimension_numbers<[1], [0], [0], [1], [0, 0, 1, 1], [], []>} : vector<72x64xbf16>, vector<64x128xbf16>, vector<72x128xf32> -> vector<72x128xf32>
    %c0_33 = arith.constant 0 : index
    %c0_34 = arith.constant 0 : index
    %48 = vector.load %arg11[%c0_33, %c0_34] : memref<1x128xf32, #tpu.memory_space<vmem>>, vector<1x128xf32>
    %49 = vector.broadcast %48 : vector<1x128xf32> to vector<72x128xf32>
    %50 = arith.addf %47, %49 : vector<72x128xf32>
    %cst_35 = arith.constant 0.000000e+00 : f32
    %51 = vector.broadcast %cst_35 : f32 to vector<72x128xf32>
    %52 = arith.maximumf %50, %51 : vector<72x128xf32>
    %53 = arith.truncf %52 : vector<72x128xf32> to vector<72x128xbf16>
    %c0_36 = arith.constant 0 : index
    %c0_37 = arith.constant 0 : index
    %54 = vector.load %arg12[%c0_36, %c0_37] : memref<128x128xbf16, #tpu.memory_space<vmem>>, vector<128x128xbf16>
    %cst_38 = arith.constant dense<0.000000e+00> : vector<72x128xf32>
    %55 = tpu.matmul %53, %54, %cst_38 {dimension_numbers = #tpu.dot_dimension_numbers<[1], [0], [0], [1], [0, 0, 1, 1], [], []>} : vector<72x128xbf16>, vector<128x128xbf16>, vector<72x128xf32> -> vector<72x128xf32>
    %c0_39 = arith.constant 0 : index
    %c0_40 = arith.constant 0 : index
    %56 = vector.load %arg13[%c0_39, %c0_40] : memref<1x128xf32, #tpu.memory_space<vmem>>, vector<1x128xf32>
    %57 = vector.broadcast %56 : vector<1x128xf32> to vector<72x128xf32>
    %58 = arith.addf %55, %57 : vector<72x128xf32>
    %c0_41 = arith.constant 0 : index
    %c0_42 = arith.constant 0 : index
    %59 = vector.load %arg14[%c0_41, %c0_42] : memref<72x128xf32, #tpu.memory_space<vmem>>, vector<72x128xf32>
    tpu.vector_store %arg14[%c0_41, %c0_42], %58 {strides = array<i32>} : memref<72x128xf32, #tpu.memory_space<vmem>>, vector<72x128xf32>,
    return
  }
  func.func @transform_0(%arg0: i32) -> (i32, i32) {
    %c0_i32 = arith.constant 0 : i32
    %c0_i32_0 = arith.constant 0 : i32
    return %arg0, %c0_i32 : i32, i32
  }
  func.func @transform_1(%arg0: i32) -> (i32, i32) {
    %c0_i32 = arith.constant 0 : i32
    %c0_i32_0 = arith.constant 0 : i32
    %c0_i32_1 = arith.constant 0 : i32
    return %c0_i32, %c0_i32_0 : i32, i32
  }
  func.func @transform_2(%arg0: i32) -> (i32, i32) {
    %c0_i32 = arith.constant 0 : i32
    %c0_i32_0 = arith.constant 0 : i32
    %c0_i32_1 = arith.constant 0 : i32
    return %c0_i32, %c0_i32_0 : i32, i32
  }
  func.func @transform_3(%arg0: i32) -> (i32, i32) {
    %c0_i32 = arith.constant 0 : i32
    %c0_i32_0 = arith.constant 0 : i32
    %c0_i32_1 = arith.constant 0 : i32
    return %c0_i32, %c0_i32_0 : i32, i32
  }
  func.func @transform_4(%arg0: i32) -> (i32, i32) {
    %c0_i32 = arith.constant 0 : i32
    %c0_i32_0 = arith.constant 0 : i32
    %c0_i32_1 = arith.constant 0 : i32
    return %c0_i32, %c0_i32_0 : i32, i32
  }
  func.func @transform_5(%arg0: i32) -> (i32, i32) {
    %c0_i32 = arith.constant 0 : i32
    %c0_i32_0 = arith.constant 0 : i32
    %c0_i32_1 = arith.constant 0 : i32
    return %c0_i32, %c0_i32_0 : i32, i32
  }
  func.func @transform_6(%arg0: i32) -> (i32, i32) {
    %c0_i32 = arith.constant 0 : i32
    %c0_i32_0 = arith.constant 0 : i32
    %c0_i32_1 = arith.constant 0 : i32
    return %c0_i32, %c0_i32_0 : i32, i32
  }
  func.func @transform_7(%arg0: i32) -> (i32, i32) {
    %c0_i32 = arith.constant 0 : i32
    %c0_i32_0 = arith.constant 0 : i32
    %c0_i32_1 = arith.constant 0 : i32
    return %c0_i32, %c0_i32_0 : i32, i32
  }
  func.func @transform_8(%arg0: i32) -> (i32, i32) {
    %c0_i32 = arith.constant 0 : i32
    %c0_i32_0 = arith.constant 0 : i32
    %c0_i32_1 = arith.constant 0 : i32
    return %c0_i32, %c0_i32_0 : i32, i32
  }
  func.func @transform_9(%arg0: i32) -> (i32, i32) {
    %c0_i32 = arith.constant 0 : i32
    %c0_i32_0 = arith.constant 0 : i32
    %c0_i32_1 = arith.constant 0 : i32
    return %c0_i32, %c0_i32_0 : i32, i32
  }
  func.func @transform_10(%arg0: i32) -> (i32, i32) {
    %c0_i32 = arith.constant 0 : i32
    %c0_i32_0 = arith.constant 0 : i32
    %c0_i32_1 = arith.constant 0 : i32
    return %c0_i32, %c0_i32_0 : i32, i32
  }
  func.func @transform_11(%arg0: i32) -> (i32, i32) {
    %c0_i32 = arith.constant 0 : i32
    %c0_i32_0 = arith.constant 0 : i32
    %c0_i32_1 = arith.constant 0 : i32
    return %c0_i32, %c0_i32_0 : i32, i32
  }
  func.func @transform_12(%arg0: i32) -> (i32, i32) {
    %c0_i32 = arith.constant 0 : i32
    %c0_i32_0 = arith.constant 0 : i32
    %c0_i32_1 = arith.constant 0 : i32
    return %c0_i32, %c0_i32_0 : i32, i32
  }
  func.func @transform_13(%arg0: i32) -> (i32, i32) {
    %c0_i32 = arith.constant 0 : i32
    %c0_i32_0 = arith.constant 0 : i32
    return %arg0, %c0_i32 : i32, i32
  }
  func.func @transform_14(%arg0: i32) -> (i32, i32) {
    %c0_i32 = arith.constant 0 : i32
    %c0_i32_0 = arith.constant 0 : i32
    return %arg0, %c0_i32 : i32, i32
  }
  func.func @transform_15(%arg0: i32) -> (i32, i32) {
    %c0_i32 = arith.constant 0 : i32
    %c0_i32_0 = arith.constant 0 : i32
    return %arg0, %c0_i32 : i32, i32
  }
}

</mosaic_0001>

<bundles_post_ra>
// kernel: tpu_custom_call.1
= control target key start
LH: loop header
LB: loop body
LE: loop exit
PB: predicated region body
PF: predicated region fallthrough
CT: control target
= control target key end

     0   :  { %s2953_s0 = inlined_call_operand.hbm [shape: f32[288,128], index: 0, kind: input, shape index: {}]   ;;  %s2954_s1 = inlined_call_operand.vmem [shape: bf16[128,128], index: 1, kind: input, shape index: {}]   ;;  %s2955_s2 = inlined_call_operand.hbm [shape: f32[1,128], index: 2, kind: input, shape index: {}]   ;;  %s2956_s3 = inlined_call_operand.vmem [shape: bf16[128,64], index: 3, kind: input, shape index: {}]   ;;  %s2957_s4 = inlined_call_operand.vmem [shape: f32[1,64], index: 4, kind: input, shape index: {}]   ;;  %s2958_s5 = inlined_call_operand.vmem [shape: bf16[64,128], index: 5, kind: input, shape index: {}]   ;;  %s2959_s6 = inlined_call_operand.vmem [shape: f32[1,128], index: 6, kind: input, shape index: {}]   ;;  %s2960_s7 = inlined_call_operand.vmem [shape: bf16[128,64], index: 7, kind: input, shape index: {}]   ;;  %s2961_s8 = inlined_call_operand.vmem [shape: f32[1,64], index: 8, kind: input, shape index: {}]   ;;  %s2962_s9 = inlined_call_operand.hbm [shape: bf16[64,128], index: 9, kind: input, shape index: {}]   ;;  %s2963_s10 = inlined_call_operand.vmem [shape: f32[1,128], index: 10, kind: input, shape index: {}]   ;;  %s2964_s11 = inlined_call_operand.vmem [shape: bf16[128,128], index: 11, kind: input, shape index: {}]   ;;  %s2965_s12 = inlined_call_operand.vmem [shape: f32[1,128], index: 12, kind: input, shape index: {}]   ;;  %s2966_s13 = inlined_call_operand.hbm [shape: f32[288,128], index: 13, kind: output, shape index: {0}]   ;;  %s2967_s14 = inlined_call_operand.hbm [shape: f32[288,128], index: 14, kind: output, shape index: {1}]   ;;  %s2968_s15 = inlined_call_operand.hbm [shape: f32[288,128], index: 15, kind: output, shape index: {2}]  }
   0x1   :  { %2980 = sst [smem:[#allocation21_spill]] %s2953_s0 }
   0x2   :  { %2981 = sst [smem:[#allocation22_spill]] %s2954_s1 }
   0x3   :  { %2982 = sst [smem:[#allocation23_spill]] %s2955_s2 }
   0x4   :  { %2983 = sst [smem:[#allocation24_spill]] %s2956_s3 }
   0x5   :  { %2984 = sst [smem:[#allocation25_spill]] %s2962_s9 }
   0x6   :  { %2985 = sst [smem:[#allocation26_spill]] %s2963_s10 }
   0x7   :  { %2986 = sst [smem:[#allocation27_spill]] %s2964_s11 }
   0x8   :  { %2987 = sst [smem:[#allocation28_spill]] %s2965_s12 }
   0x9   :  { %2988 = sst [smem:[#allocation29_spill]] %s2966_s13 }
   0xa   :  { %2989 = sst [smem:[#allocation30_spill]] %s2967_s14 }
   0xb   :  { %2990 = sst [smem:[#allocation31_spill]] %s2968_s15 }
   0xc   :  { %21 = vsyncpa [#allocation3], 0 }
   0xd   :  { %23 = vsyncpa [#allocation3 + $0x1], 0 }
   0xe   :  { %24 = vsyncpa [#allocation6], 0 }
   0xf   :  { %25 = vsyncpa [#allocation4], 0 }
  0x10   :  { %27 = vsyncpa [#allocation4 + $0x1], 0 }
  0x11   :  { %28 = vsyncpa [#allocation10], 0 }
  0x12   :  { %30 = vsyncpa [#allocation10 + $0x1], 0  ;;  %s2417_s18 = smov 0   ;;  %s2419_s19 = smov 0  }
  0x13   :  { %s2421_s20 = smov 0   ;;  %s2423_s21 = smov 0  }
  0x14 LB: > { %2991 = sst [smem:[#allocation16_spill]] %s2314_s18  ;;  %s2438_s22 = sadd.s32 4294967295, %s2326_s21   ;;  %s2326_s21 = sphi %s2423_s21, %s3023_s21   ;;  %s2322_s20 = sphi %s2421_s20, %s3027_s20   ;;  %s2318_s19 = sphi %s2419_s19, %s3026_s19   ;;  %s2314_s18 = sphi %s2417_s18, %s3025_s18  }
  0x15   : > { %s2969_s23 = sadd.s32 4294967294, %s2326_s21   ;;  %s2442_s24 = sadd.s32 1, %s2326_s21  }
  0x16   : > { %2992 = sst [smem:[#allocation17_spill]] %s2442_s24  ;;  %s43_s25 = sadd.s32 1, %s2322_s20 }
  0x17   : > { %s40_s26 = ssub.s32 %s2326_s21, %s2442_s24  ;;  %p50_p0 = scmp.ne.s32.totalorder %s2322_s20, %s2318_s19 }
  0x18   : > { %p41_p1 = scmp.eq.s32.totalorder %s40_s26, 0  ;;  %p51_p2 = scmp.eq.s32.totalorder %s2326_s21, 0 }
  0x19   : > { %p56_p3 = scmp.ne.s32.totalorder %s2318_s19, %s2314_s18  ;;  %p57_p4 = scmp.eq.s32.totalorder %s2438_s22, 0 }
  0x1a   : > { %s2454_s27 = scalar_select %p41_p1, %s2322_s20, %s43_s25  }
  0x1b   : > { %p2456_p5 = por %p51_p2, %p50_p0  ;;  %p2462_p6 = por %p57_p4, %p56_p3 }
  0x1c   : > { %2993 = sst [smem:[#allocation18_spill]] %s2454_s27  ;;  %p332_p7 = scmp.eq.s32.totalorder %s2438_s22, 3 }
  0x1d   : > { %p338_p8 = scmp.eq.s32.totalorder %s2969_s23, 3  ;;  %p1712_p9 = scmp.ge.s32.totalorder %s2326_s21, 1 }
  0x1e   : > { %p397_p10 = scmp.lt.s32.totalorder %s2326_s21, 5  ;;  %p2471_p11 = por %p332_p7, %p50_p0 }
  0x1f   : > { %p2475_p12 = por %p338_p8, %p56_p3  ;;  %s3001_s2 = sld [smem:[#allocation23_spill]] }
  0x20   : > { %s2996_s30 = scalar_select %p2471_p11, 1, 0 }
  0x21   : > { %s2998_s16 = scalar_select %p2475_p12, 1, 0 }
  0x22   : > { %2997 = sst [smem:[#allocation19_spill]] %s2996_s30  ;;  %p2479_p13 = pnand %p1712_p9, %p397_p10 }
  0x23   : > { %2999 = sst [smem:[#allocation20_spill]] %s2998_s16  ;;  %s2328_s27 = smov [#allocation5]  }
  0x24   : > { %p1978_p1 = pneg %p2479_p13  ;;  %s414_s24 = sshll.u32 %s2328_s27, 4  ;;  %s415_s24 = int_to_ptr.vmem [resolvable:$true] %s414_s24 }
  0x25   : > { %s412_s23 = sshll.u32 %s3001_s2, 4  ;;  %p2001_p2 = scmp.lt.s32.totalorder %s2326_s21, 4  ;;  %s413_s23 = int_to_ptr.hbm [resolvable:$true] %s412_s23 }
  0x26   : > { %p1979_p0 = pnand %p1978_p1, %p57_p4  ;;  %s3002_s9 = sld [smem:[#allocation25_spill]] }
  0x27   : > { %p2496_p3 = pnand %p2001_p2, %p2456_p5  ;;  %s2329_s26 = smov [#allocation7]  }
  0x28   : > { %1981 = dma.hbm_to_vmem [thread:$0]  (!%p1979_p0), %s413_s23, 16, %s415_s24, [#allocation6]  }
  0x29   : > { %s443_s2 = sshll.u32 %s2329_s26, 4  ;;  %s466_s27 = sand.u32 1, %s2322_s20   ;;  %s444_s2 = int_to_ptr.vmem [resolvable:$true] %s443_s2 }
  0x2a   : > { %s2330_s12 = smov 64   ;;  %s2331_s15 = smov 4  }
  0x2b   : > { %s1960_s14 = smul.u32 72, %s466_s27  ;;  %s3004_s0 = sld [smem:[#allocation21_spill]] }
  0x2c   : > { %s441_s13 = sshll.u32 %s3002_s9, 4  ;;  %s1904_s30 = smul.u32 72, %s2326_s21  ;;  %s442_s13 = int_to_ptr.hbm [resolvable:$true] %s441_s13 }
  0x2d   : > { %1984 = dma.hbm_to_vmem [thread:$0]  (!%p1979_p0), %s442_s13, 512, %s444_s2, [#allocation6], %s2330_s12, %s2330_s12, %s2331_s15  }
  0x2e   : > { %s470_s23 = scalar_lea.vmem [#allocation2], %s1960_s14  ;;  %s467_s9 = scalar_lea.sflag [#allocation3], %s466_s27 }
  0x2f   : > { %s478_s24 = sshll.u32 %s470_s23, 4  ;;  %p2170_p7 = pneg %p2496_p3  ;;  %s479_s24 = int_to_ptr.vmem [resolvable:$true] %s478_s24 }
  0x31   : > { %s475_s16 = scalar_lea.hbm %s3004_s0, %s1904_s30  ;;  %s2173_s13 = scalar_lea.hbm %s3004_s0, 288 }
  0x32   : > { %s476_s28 = sshll.u32 %s475_s16, 4  ;;  %s477_s28 = int_to_ptr.hbm [resolvable:$true] %s476_s28 }
  0x33   : > { %s2166_s11 = sshra.s32 %s477_s28, 4  ;;  %s2167_s11 = int_to_ptr.hbm [resolvable:$true] %s2166_s11 }
  0x34   : > { %s2168_s26 = scalar_lea.hbm %s2167_s11, 72  ;;  %p2174_p10 = scmp.lt.s32.totalorder %s2167_s11, %s3004_s0 }
  0x35   : > { %p2169_p5 = scmp.ne.s32.totalorder %s2167_s11, %s2168_s26  ;;  %p2175_p1 = scmp.lt.s32.totalorder %s2173_s13, %s2168_s26 }
  0x37   : > { %p2171_p8 = pnand %p2170_p7, %p2169_p5  ;;  %p2176_p0 = por %p2175_p1, %p2174_p10 }
  0x39   : > { %p2172_p9 = pneg %p2171_p8 }
  0x3b   : > { %p2177_p2 = pnand %p2176_p0, %p2172_p9 }
  0x3d   : > { %2180 = shalt.err (!%p2177_p2)
}
  0x3e   : > { %s2332_s14 = smov 128   ;;  %s2333_s30 = smov 8  }
  0x3f   : > { %1988 = dma.hbm_to_vmem [thread:$0]  (!%p2496_p3), %s477_s28, 1152, %s479_s24, %s467_s9, %s2332_s14, %s2332_s14, %s2333_s30  }
  0x40   : > { %490 = sbr.rel (%p2479_p13) target bundleno = 1183 (0x49f), region = 72  ;;  %s2518_s27 = sand.u32 (!%p2479_p13), 1, %s2318_s19  }
  0x41   : > { %s2521_s18 = smul.u32 (!%p2479_p13), 72, %s2518_s27  ;;  %s493_s11 = scalar_lea.sflag (!%p2479_p13), [#allocation3], %s2518_s27 }
  0x43   : > { %s2525_s16 = scalar_lea.vmem (!%p2479_p13), [#allocation2], %s2521_s18 }
  0x45   : > { %2297 = dma.done.wait (%p2462_p6), %s493_s11, 1152  }
  0x46   : > { %2299 = vsyncadd (%p2462_p6), %s493_s11, 4294966144 }
  0x47   : > { %2301 = dma.done.wait (%p57_p4), [#allocation6], 528  }
  0x48   : > { %2303 = vsyncadd (%p57_p4), [#allocation6], 4294966768  ;;  %s3005_s1 = sld [smem:[#allocation22_spill]]  ;;  %v2560_v8 = vld [vmem:[%s2525_s16] sm:$0xff]  ;;  %v2563_v9 = vld [vmem:[%s2525_s16 + $0x8] sm:$0xff]  ;;  %vm849_vm0 = vcmask 523264  }
  0x49   : > { %v2566_v10 = vld [vmem:[%s2525_s16 + $0x20] sm:$0xff]  ;;  %v2569_v11 = vld [vmem:[%s2525_s16 + $0x28] sm:$0xff]  ;;  %v578_v12 = vpack.c.bf16 %v2563_v9, %v2560_v8  ;;  %s3006_s3 = sld [smem:[#allocation24_spill]]  ;;  %v2585_v17 = vld [vmem:[%s2525_s16 + $0x10] sm:$0xff]  ;;  %s2654_s15 = scalar_lea.vmem [#allocation9], %s2521_s18 }
  0x4a   : > { %v580_v13 = vpack.c.bf16 %v2569_v11, %v2566_v10  ;;  %v2588_v18 = vld [vmem:[%s2525_s16 + $0x18] sm:$0xff]  ;;  %v2591_v19 = vld [vmem:[%s2525_s16 + $0x30] sm:$0xff]  ;;  %v2610_v26 = vld [vmem:[%s2525_s16 + $0x40] sm:$0xff]  ;;  %s2786_s14 = scalar_lea.vmem [#allocation11], %s2521_s18  ;;  %s3013_s25 = sld [smem:[#allocation27_spill]] }
  0x4b   : > { %v2594_v20 = vld [vmem:[%s2525_s16 + $0x38] sm:$0xff]  ;;  %v579_v22 = vpack.c.bf16 %v2588_v18, %v2585_v17  ;;  %v582_v27 = vpack.c.bf16 %v2610_v26, %v2610_v26  ;;  %v2046_v32 = vld [vmem:[#allocation5] ss:$0 sm:$0xff]  ;;  %s2334_s16 = smov 64   ;;  %s3014_s24 = sld [smem:[#allocation26_spill]] }
  0x4c   : > { %v581_v23 = vpack.c.bf16 %v2594_v20, %v2591_v19  ;;  %925 = vrot.lane.b32.xlu1 %v2560_v8, %s2334_s16  ;;  %s1536_s28 = sshll.u32 %s2654_s15, 4  ;;  %s1501_s26 = sand.u32 1, %s2438_s22   ;;  %s1537_s28 = int_to_ptr.vmem [resolvable:$true] %s1536_s28 }
  0x4d   : > { %s2859_s2 = smul.u32 72, %s2438_s22  ;;  %s3016_s10 = sld [smem:[#allocation30_spill]] }
  0x4e   : > { %v1912_v0 = vld [vmem:[%s3005_s1 + $0x38] sm:$0xff]  ;;  %v1911_v1 = vld [vmem:[%s3005_s1 + $0x30] sm:$0xff]  ;;  %v1910_v2 = vld [vmem:[%s3005_s1 + $0x28] sm:$0xff]  ;;  %s1553_s9 = sshll.u32 %s2786_s14, 4  ;;  %s2866_s17 = scalar_lea.sflag [#allocation10], %s1501_s26  ;;  %s1554_s9 = int_to_ptr.vmem [resolvable:$true] %s1553_s9 }
  0x4f   : > { %651 = vmatpush.bf16.msra.mxu0 %v1912_v0  ;;  %1948 = vmatpush.bf16.msra.mxu1 %v1912_v0  ;;  %v1909_v3 = vld [vmem:[%s3005_s1 + $0x20] sm:$0xff]  ;;  %v1908_v4 = vld [vmem:[%s3005_s1 + $0x18] sm:$0xff]  ;;  %v1907_v5 = vld [vmem:[%s3005_s1 + $0x10] sm:$0xff] }
  0x50   : > { %v1906_v6 = vld [vmem:[%s3005_s1 + $0x8] sm:$0xff]  ;;  %v1905_v7 = vld [vmem:[%s3005_s1] sm:$0xff]  ;;  %v1920_v14 = vld [vmem:[%s3006_s3 + $0x38] sm:$0xff] }
  0x51   : > { %v1919_v15 = vld [vmem:[%s3006_s3 + $0x30] sm:$0xff]  ;;  %v1918_v16 = vld [vmem:[%s3006_s3 + $0x28] sm:$0xff]  ;;  %v1917_v21 = vld [vmem:[%s3006_s3 + $0x20] sm:$0xff] }
  0x52   : > { %v1916_v24 = vld [vmem:[%s3006_s3 + $0x18] sm:$0xff]  ;;  %v1915_v25 = vld [vmem:[%s3006_s3 + $0x10] sm:$0xff]  ;;  %v1914_v28 = vld [vmem:[%s3006_s3 + $0x8] sm:$0xff] }
  0x53   : > { %652 = vmatpush.bf16.msra.mxu0 %v1911_v1  ;;  %1949 = vmatpush.bf16.msra.mxu1 %v1911_v1  ;;  %v1913_v29 = vld [vmem:[%s3006_s3] sm:$0xff]  ;;  %v1924_v0 = vld [vmem:[%s2958_s5 + $0x18] sm:$0xff]  ;;  %v1923_v1 = vld [vmem:[%s2958_s5 + $0x10] sm:$0xff]  ;;  %s1535_s30 = scalar_lea.hbm %s3016_s10, %s2859_s2 }
  0x54   : > { %927 = vrot.lane.b32.xlu1 %v2563_v9, %s2334_s16  ;;  %869 = vmatpush.bf16.msra.mxu2 %v1924_v0  ;;  %s1538_s11 = sshll.u32 %s1535_s30, 4  ;;  %s1539_s11 = int_to_ptr.hbm [resolvable:$true] %s1538_s11 }
  0x55   : > { %1956 = vmatpush.bf16.msra.mxu3 %v1924_v0 }
  0x57   : > { %653 = vmatpush.bf16.msra.mxu0 %v1910_v2  ;;  %1950 = vmatpush.bf16.msra.mxu1 %v1910_v2  ;;  %v1922_v2 = vld [vmem:[%s2958_s5 + $0x8] sm:$0xff] }
  0x58   : > { %870 = vmatpush.bf16.msra.mxu2 %v1923_v1 }
  0x59   : > { %1957 = vmatpush.bf16.msra.mxu3 %v1923_v1 }
  0x5b   : > { %654 = vmatpush.bf16.msra.mxu0 %v1909_v3  ;;  %1951 = vmatpush.bf16.msra.mxu1 %v1909_v3  ;;  %v1921_v3 = vld [vmem:[%s2958_s5] sm:$0xff] }
  0x5c   : > { %931 = vrot.lane.b32.xlu1 %v2588_v18, %s2334_s16  ;;  %871 = vmatpush.bf16.msra.mxu2 %v1922_v2 }
  0x5d   : > { %1958 = vmatpush.bf16.msra.mxu3 %v1922_v2 }
  0x5f   : > { %655 = vmatpush.bf16.msra.mxu0 %v1908_v4  ;;  %1952 = vmatpush.bf16.msra.mxu1 %v1908_v4 }
  0x60   : > { %872 = vmatpush.bf16.msra.mxu2 %v1921_v3 }
  0x61   : > { %1959 = vmatpush.bf16.msra.mxu3 %v1921_v3 }
  0x63   : > { %656 = vmatpush.bf16.msra.mxu0 %v1907_v5  ;;  %1953 = vmatpush.bf16.msra.mxu1 %v1907_v5  ;;  %v2047_v5 = vld [vmem:[%s2957_s4] ss:$0 sm:$0xff] }
  0x64   : > { %933 = vrot.lane.b32.xlu1 %v2566_v10, %s2334_s16 }
  0x67   : > { %657 = vmatpush.bf16.msra.mxu0 %v1906_v6  ;;  %1954 = vmatpush.bf16.msra.mxu1 %v1906_v6 }
  0x6b   : > { %658 = vmatpush.bf16.msra.mxu0 %v1905_v7  ;;  %1955 = vmatpush.bf16.msra.mxu1 %v1905_v7 }
  0x6e   : > { %659 = vmatmul.bf16.vlgmr.msra.gmra.mxu0 %v578_v12  ;;  %669 = vmatmul.bf16.vlgmr.msra.gmra.mxu1 %v580_v13 }
  0x6f   : > { %766 = vmatpush.bf16.msrb.mxu1 %v1920_v14 }
  0x73   : > { %767 = vmatpush.bf16.msrb.mxu1 %v1919_v15 }
  0x77   : > { %768 = vmatpush.bf16.msrb.mxu1 %v1918_v16 }
  0x7b   : > { %769 = vmatpush.bf16.msrb.mxu1 %v1917_v21 }
  0x7e   : > { %664 = vmatmul.bf16.gmra.mxu0 %v579_v22  ;;  %674 = vmatmul.bf16.gmra.mxu1 %v581_v23 }
  0x7f   : > { %770 = vmatpush.bf16.msrb.mxu1 %v1916_v24 }
  0x83   : > { %771 = vmatpush.bf16.msrb.mxu1 %v1915_v25 }
  0x87   : > { %772 = vmatpush.bf16.msrb.mxu1 %v1914_v28 }
  0x8b   : > { %773 = vmatpush.bf16.msrb.mxu1 %v1913_v29 }
  0x8e   : > { %679 = vmatmul.bf16.gmra.mxu1 %v582_v27 }
  0xeb   : > { %v660_v30 = vpop.f32.mrf.mxu0  ;;  %v670_v31 = vpop.f32.mrf.mxu1 }
  0xec   : > { %v661_v33 = vadd.f32 %v2046_v32, %v660_v30  ;;  %v671_v50 = vadd.f32 %v2046_v32, %v670_v31 }
  0xee   : > { %v684_v37 = vmax.f32 %v661_v33, 0.0  ;;  %v688_v53 = vmax.f32 %v671_v50, 0.0 }
  0xf3   : > { %v662_v34 = vpop.f32.mrf.mxu0  ;;  %v672_v35 = vpop.f32.mrf.mxu1 }
  0xf4   : > { %v663_v36 = vadd.f32 %v2046_v32, %v662_v34  ;;  %v673_v51 = vadd.f32 %v2046_v32, %v672_v35 }
  0xf6   : > { %v685_v38 = vmax.f32 %v663_v36, 0.0  ;;  %v689_v54 = vmax.f32 %v673_v51, 0.0 }
  0xf8   : > { %v693_v39 = vpack.c.bf16 %v685_v38, %v684_v37  ;;  %v695_v55 = vpack.c.bf16 %v689_v54, %v688_v53 }
  0xfa   : > { %774 = vmatmul.bf16.vlgmr.msrb.gmra.mxu1 %v693_v39 }
  0xfb   : > { %v665_v40 = vpop.f32.mrf.mxu0  ;;  %v675_v41 = vpop.f32.mrf.mxu1 }
  0xfc   : > { %v666_v42 = vadd.f32 %v2046_v32, %v665_v40  ;;  %v676_v56 = vadd.f32 %v2046_v32, %v675_v41 }
  0xfe   : > { %v686_v46 = vmax.f32 %v666_v42, 0.0  ;;  %v690_v58 = vmax.f32 %v676_v56, 0.0 }
 0x103   : > { %v667_v43 = vpop.f32.mrf.mxu0  ;;  %v677_v44 = vpop.f32.mrf.mxu1 }
 0x104   : > { %v668_v45 = vadd.f32 %v2046_v32, %v667_v43  ;;  %v678_v57 = vadd.f32 %v2046_v32, %v677_v44  ;;  %v2048_v43 = vld [vmem:[%s2959_s6] ss:$0 sm:$0xff] }
 0x106   : > { %v687_v47 = vmax.f32 %v668_v45, 0.0  ;;  %v691_v59 = vmax.f32 %v678_v57, 0.0 }
 0x108   : > { %v694_v48 = vpack.c.bf16 %v687_v47, %v686_v46  ;;  %v696_v60 = vpack.c.bf16 %v691_v59, %v690_v58 }
 0x10a   : > { %779 = vmatmul.bf16.gmra.mxu1 %v694_v48 }
 0x10b   : > { %v680_v49 = vpop.f32.mrf.mxu1 }
 0x10c   : > { %v681_v61 = vadd.f32 %v2046_v32, %v680_v49 }
 0x10e   : > { %v692_v62 = vmax.f32 %v681_v61, 0.0  ;;  %v1932_v61 = vld [vmem:[%s2960_s7 + $0x38] sm:$0xff] }
 0x10f   : > { %1241 = vmatpush.bf16.msrb.mxu3 %v1932_v61 }
 0x110   : > { %v697_v63 = vpack.c.bf16 %v692_v62, %v692_v62 }
 0x113   : > { %v682_v52 = vpop.f32.mrf.mxu1 }
 0x11a   : > { %784 = vmatmul.bf16.gmra.mxu1 %v695_v55 }
 0x12a   : > { %789 = vmatmul.bf16.gmra.mxu1 %v696_v60  ;;  %v926_v60 = vpop.permute.xlu1 %925 }
 0x13a   : > { %794 = vmatmul.bf16.gmra.mxu1 %v697_v63  ;;  %v1930_v63 = vld [vmem:[%s2960_s7 + $0x28] sm:$0xff] }
 0x177   : > { %v775_v4 = vpop.f32.mrf.mxu1 }
 0x178   : > { %v776_v6 = vadd.f32 %v2047_v5, %v775_v4 }
 0x17a   : > { %v799_v9 = vmax.f32 %v776_v6, 0.0 }
 0x17f   : > { %v777_v7 = vpop.f32.mrf.mxu1 }
 0x180   : > { %v778_v8 = vadd.f32 %v2047_v5, %v777_v7  ;;  %v1929_v7 = vld [vmem:[%s2960_s7 + $0x20] sm:$0xff] }
 0x182   : > { %v800_v12 = vmax.f32 %v778_v8, 0.0  ;;  %v1928_v8 = vld [vmem:[%s2960_s7 + $0x18] sm:$0xff] }
 0x184   : > { %v808_v13 = vpack.c.bf16 %v800_v12, %v799_v9 }
 0x186   : > { %1800 = vmatmul.msk.bf16.vlgmr.msra.gmra.mxu2 %vm849_vm0, %v808_v13 }
 0x187   : > { %v780_v10 = vpop.f32.mrf.mxu1 }
 0x188   : > { %v781_v14 = vadd.f32 %v2047_v5, %v780_v10 }
 0x18a   : > { %v801_v18 = vmax.f32 %v781_v14, 0.0 }
 0x18f   : > { %v782_v15 = vpop.f32.mrf.mxu1 }
 0x190   : > { %v783_v16 = vadd.f32 %v2047_v5, %v782_v15 }
 0x192   : > { %v802_v21 = vmax.f32 %v783_v16, 0.0 }
 0x194   : > { %v809_v22 = vpack.c.bf16 %v802_v21, %v801_v18 }
 0x196   : > { %1801 = vmatmul.msk.bf16.gmra.mxu2 %vm849_vm0, %v809_v22  ;;  %v1927_v22 = vld [vmem:[%s2960_s7 + $0x10] sm:$0xff] }
 0x197   : > { %v785_v23 = vpop.f32.mrf.mxu1 }
 0x198   : > { %v786_v24 = vadd.f32 %v2047_v5, %v785_v23 }
 0x19a   : > { %v803_v28 = vmax.f32 %v786_v24, 0.0 }
 0x19f   : > { %v787_v25 = vpop.f32.mrf.mxu1 }
 0x1a0   : > { %v788_v27 = vadd.f32 %v2047_v5, %v787_v25 }
 0x1a2   : > { %v804_v29 = vmax.f32 %v788_v27, 0.0  ;;  %v1926_v27 = vld [vmem:[%s2960_s7 + $0x8] sm:$0xff] }
 0x1a4   : > { %v810_v30 = vpack.c.bf16 %v804_v29, %v803_v28 }
 0x1a6   : > { %1802 = vmatmul.msk.bf16.gmra.mxu2 %vm849_vm0, %v810_v30 }
 0x1a7   : > { %v790_v31 = vpop.f32.mrf.mxu1 }
 0x1a8   : > { %v791_v32 = vadd.f32 %v2047_v5, %v790_v31 }
 0x1aa   : > { %v805_v35 = vmax.f32 %v791_v32, 0.0 }
 0x1af   : > { %v792_v33 = vpop.f32.mrf.mxu1 }
 0x1b0   : > { %v793_v34 = vadd.f32 %v2047_v5, %v792_v33 }
 0x1b2   : > { %v806_v36 = vmax.f32 %v793_v34, 0.0 }
 0x1b4   : > { %v811_v37 = vpack.c.bf16 %v806_v36, %v805_v35 }
 0x1b6   : > { %1803 = vmatmul.msk.bf16.vlgmr.msra.gmra.mxu3 %vm849_vm0, %v811_v37 }
 0x1b7   : > { %v795_v38 = vpop.f32.mrf.mxu1 }
 0x1b8   : > { %v796_v39 = vadd.f32 %v2047_v5, %v795_v38  ;;  %v1925_v38 = vld [vmem:[%s2960_s7] sm:$0xff] }
 0x1ba   : > { %v807_v40 = vmax.f32 %v796_v39, 0.0 }
 0x1bc   : > { %v812_v42 = vpack.c.bf16 %v807_v40, %v807_v40 }
 0x1bf   : > { %v797_v41 = vpop.f32.mrf.mxu1 }
 0x1c6   : > { %1804 = vmatmul.msk.bf16.gmra.mxu3 %vm849_vm0, %v812_v42 }
 0x209   : > { %v874_v44 = vpop.f32.mrf.mxu2 }
 0x20a   : > { %v2651_v45 = vadd.f32 %v2048_v43, %v874_v44 }
 0x20c   : > { %898 = vst [vmem:[%s2654_s15] sm:$0xff] %v2651_v45  ;;  %907 = vrot.lane.b32.xlu0 %v2651_v45, %s2334_s16 }
 0x211   : > { %v876_v46 = vpop.f32.mrf.mxu2 }
 0x212   : > { %v2660_v47 = vadd.f32 %v2048_v43, %v876_v46 }
 0x214   : > { %899 = vst [vmem:[%s2654_s15 + $0x8] sm:$0xff] %v2660_v47  ;;  %909 = vrot.lane.b32.xlu0 %v2660_v47, %s2334_s16 }
 0x219   : > { %v879_v48 = vpop.f32.mrf.mxu2 }
 0x21a   : > { %v2666_v49 = vadd.f32 %v2048_v43, %v879_v48 }
 0x21c   : > { %900 = vst [vmem:[%s2654_s15 + $0x10] sm:$0xff] %v2666_v49  ;;  %911 = vrot.lane.b32.xlu2 %v2666_v49, %s2334_s16  ;;  %929 = vrot.lane.b32.xlu0 %v2585_v17, %s2334_s16 }
 0x221   : > { %v881_v50 = vpop.f32.mrf.mxu2 }
 0x222   : > { %v2674_v51 = vadd.f32 %v2048_v43, %v881_v50 }
 0x224   : > { %901 = vst [vmem:[%s2654_s15 + $0x18] sm:$0xff] %v2674_v51  ;;  %913 = vrot.lane.b32.xlu2 %v2674_v51, %s2334_s16 }
 0x229   : > { %v884_v52 = vpop.f32.mrf.mxu2 }
 0x22a   : > { %v2680_v53 = vadd.f32 %v2048_v43, %v884_v52 }
 0x22c   : > { %902 = vst [vmem:[%s2654_s15 + $0x20] sm:$0xff] %v2680_v53  ;;  %915 = vrot.lane.b32.xlu2 %v2680_v53, %s2334_s16 }
 0x231   : > { %v886_v54 = vpop.f32.mrf.mxu2 }
 0x232   : > { %v2686_v17 = vadd.f32 %v2048_v43, %v886_v54 }
 0x234   : > { %903 = vst [vmem:[%s2654_s15 + $0x28] sm:$0xff] %v2686_v17  ;;  %917 = vrot.lane.b32.xlu0 %v2686_v17, %s2334_s16  ;;  %935 = vrot.lane.b32.xlu2 %v2569_v11, %s2334_s16 }
 0x239   : > { %v889_v55 = vpop.f32.mrf.mxu3 }
 0x23a   : > { %v2694_v56 = vadd.f32 %v2048_v43, %v889_v55 }
 0x23c   : > { %904 = vst [vmem:[%s2654_s15 + $0x30] sm:$0xff] %v2694_v56  ;;  %919 = vrot.lane.b32.xlu0 %v2694_v56, %s2334_s16  ;;  %937 = vrot.lane.b32.xlu2 %v2591_v19, %s2334_s16 }
 0x241   : > { %v891_v57 = vpop.f32.mrf.mxu3 }
 0x242   : > { %v2702_v58 = vadd.f32 %v2048_v43, %v891_v57 }
 0x244   : > { %905 = vst [vmem:[%s2654_s15 + $0x38] sm:$0xff] %v2702_v58  ;;  %921 = vrot.lane.b32.xlu1 %v2702_v58, %s2334_s16  ;;  %939 = vrot.lane.b32.xlu0 %v2594_v20, %s2334_s16  ;;  %v1931_v20 = vld [vmem:[%s2960_s7 + $0x30] sm:$0xff] }
 0x245   : > { %941 = vrot.lane.b32.xlu2 %v2610_v26, %s2334_s16  ;;  %v928_v26 = vpop.permute.xlu1 %927  ;;  %1242 = vmatpush.bf16.msrb.mxu3 %v1931_v20 }
 0x249   : > { %v894_v11 = vpop.f32.mrf.mxu3  ;;  %1243 = vmatpush.bf16.msrb.mxu3 %v1930_v63 }
 0x24a   : > { %v2712_v59 = vadd.f32 %v2048_v43, %v894_v11 }
 0x24c   : > { %906 = vst [vmem:[%s2654_s15 + $0x40] sm:$0xff] %v2712_v59  ;;  %923 = vrot.lane.b32.xlu1 %v2712_v59, %s2334_s16  ;;  %s2210_s16 = sshra.s32 %s1539_s11, 4  ;;  %s2211_s16 = int_to_ptr.hbm [resolvable:$true] %s2210_s16 }
 0x24d   : > { %1244 = vmatpush.bf16.msrb.mxu3 %v1929_v7  ;;  %v932_v12 = vpop.permute.xlu1 %931  ;;  %s2212_s23 = scalar_lea.hbm %s2211_s16, 72  ;;  %p2217_p3 = scmp.lt.s32.totalorder %s2211_s16, %s3016_s10 }
 0x24e   : > { %p2213_p4 = scmp.ne.s32.totalorder %s2211_s16, %s2212_s23 }
 0x250   : > { %p2214_p6 = pnand %p2213_p4, %p2471_p11 }
 0x251   : > { %v896_v19 = vpop.f32.mrf.mxu3  ;;  %1245 = vmatpush.bf16.msrb.mxu3 %v1928_v8 }
 0x252   : > { %p2215_p13 = pneg %p2214_p6 }
 0x255   : > { %1246 = vmatpush.bf16.msrb.mxu3 %v1927_v22  ;;  %v934_v35 = vpop.permute.xlu1 %933 }
 0x259   : > { %1247 = vmatpush.bf16.msrb.mxu3 %v1926_v27 }
 0x25d   : > { %1248 = vmatpush.bf16.msrb.mxu3 %v1925_v38 }
 0x276   : > { %v912_v62 = vpop.permute.xlu2 %911 }
 0x277   : > { %v945_v4 = vmul.f32 0.5, %v912_v62 }
 0x279   : > { %v956_v9 = vmul.f32 1.442695, %v945_v4 }
 0x27e   : > { %v914_v0 = vpop.permute.xlu2 %913  ;;  %v908_v1 = vpop.permute.xlu0 %907 }
 0x27f   : > { %v946_v2 = vmul.f32 0.5, %v914_v0  ;;  %v943_v3 = vmul.f32 0.5, %v908_v1 }
 0x281   : > { %v958_v5 = vmul.f32 1.442695, %v946_v2  ;;  %v952_v6 = vmul.f32 1.442695, %v943_v3 }
 0x283   : > { %2052 = vpow2.f32 %v958_v5 }
 0x284   : > { %2054 = vpow2.f32 %v952_v6 }
 0x285   : > { %2056 = vpow2.f32 %v956_v9 }
 0x286   : > { %v916_v13 = vpop.permute.xlu2 %915  ;;  %v910_v10 = vpop.permute.xlu0 %909 }
 0x287   : > { %v947_v14 = vmul.f32 0.5, %v916_v13  ;;  %v944_v15 = vmul.f32 0.5, %v910_v10 }
 0x289   : > { %v2053_v16 = vpop.eup %2052  ;;  %v960_v18 = vmul.f32 1.442695, %v947_v14  ;;  %v954_v21 = vmul.f32 1.442695, %v944_v15 }
 0x28a   : > { %v2055_v23 = vpop.eup %2054  ;;  %v973_v24 = vmul.f32 %v2053_v16, %v932_v12 }
 0x28b   : > { %v970_v25 = vmul.f32 %v2055_v23, %v926_v60  ;;  %2058 = vpow2.f32 %v960_v18  ;;  %v2057_v30 = vpop.eup %2056 }
 0x28c   : > { %2060 = vpow2.f32 %v954_v21  ;;  %v982_v28 = vadd.f32 %v973_v24, %v2674_v51 }
 0x28d   : > { %v979_v29 = vadd.f32 %v970_v25, %v2651_v45 }
 0x28e   : > { %v1808_v31 = vmul.f32 -1.442695, %v982_v28  ;;  %v930_v32 = vpop.permute.xlu0 %929 }
 0x28f   : > { %v1805_v33 = vmul.f32 -1.442695, %v979_v29  ;;  %v972_v34 = vmul.f32 %v2057_v30, %v930_v32 }
 0x290   : > { %2062 = vpow2.f32 %v1808_v31 }
 0x291   : > { %v2059_v36 = vpop.eup %2058  ;;  %2064 = vpow2.f32 %v1805_v33  ;;  %v981_v37 = vadd.f32 %v972_v34, %v2666_v49 }
 0x292   : > { %v2061_v39 = vpop.eup %2060  ;;  %v974_v40 = vmul.f32 %v2059_v36, %v934_v35 }
 0x293   : > { %v971_v41 = vmul.f32 %v2061_v39, %v928_v26  ;;  %v1807_v42 = vmul.f32 -1.442695, %v981_v37 }
 0x294   : > { %v983_v43 = vadd.f32 %v974_v40, %v2680_v53  ;;  %v936_v40 = vpop.permute.xlu2 %935 }
 0x295   : > { %v980_v44 = vadd.f32 %v971_v41, %v2660_v47  ;;  %2066 = vpow2.f32 %v1807_v42 }
 0x296   : > { %v2063_v45 = vpop.eup %2062  ;;  %v1809_v46 = vmul.f32 -1.442695, %v983_v43 }
 0x297   : > { %v2065_v48 = vpop.eup %2064  ;;  %v1806_v50 = vmul.f32 -1.442695, %v980_v44  ;;  %v2747_v51 = vadd.f32 1.0, %v2063_v45 }
 0x298   : > { %v1015_v49 = vadd.f32 1.0, %v2065_v48  ;;  %2068 = vpow2.f32 %v1809_v46 }
 0x299   : > { %2070 = vpow2.f32 %v1806_v50  ;;  %v1078_v19 = vand.u32 2147483647, %v2747_v51  ;;  %v1080_v60 = vand.u32 2147483648, %v2747_v51  ;;  %vm1074_vm1 = vweird.f32 %v2747_v51 }
 0x29a   : > { %2072 = vrcp.f32 %v1015_v49  ;;  %v1033_v20 = vand.u32 2147483647, %v1015_v49  ;;  %v1035_v26 = vand.u32 2147483648, %v1015_v49  ;;  %vm1029_vm2 = vweird.f32 %v1015_v49 }
 0x29b   : > { %v2067_v52 = vpop.eup %2066  ;;  %2074 = vrcp.f32 %v2747_v51  ;;  %vm2765_vm3 = vcmp.eq.f32.partialorder %v1078_v19, 8.507059e+37  ;;  %v1081_v5 = vor.u32 1.1754944e-38, %v1080_v60 }
 0x29c   : > { %v2750_v54 = vadd.f32 1.0, %v2067_v52  ;;  %vm2770_vm5 = vcmp.eq.f32.partialorder %v1033_v20, 8.507059e+37  ;;  %v1036_v13 = vor.u32 1.1754944e-38, %v1035_v26 }
 0x29e   : > { %v2069_v55 = vpop.eup %2068  ;;  %2076 = vrcp.f32 %v2750_v54  ;;  %v1063_v63 = vand.u32 2147483647, %v2750_v54  ;;  %v1065_v3 = vand.u32 2147483648, %v2750_v54  ;;  %vm1059_vm6 = vweird.f32 %v2750_v54 }
 0x29f   : > { %v2071_v47 = vpop.eup %2070  ;;  %v2753_v53 = vadd.f32 1.0, %v2069_v55 }
 0x2a0   : > { %v2073_v57 = vpop.eup %2072  ;;  %v2755_v11 = vadd.f32 1.0, %v2071_v47  ;;  %vm2775_vm7 = vcmp.eq.f32.partialorder %v1063_v63, 8.507059e+37  ;;  %v1066_v24 = vor.u32 1.1754944e-38, %v1065_v3  ;;  %v938_v63 = vpop.permute.xlu2 %937 }
 0x2a1   : > { %v2075_v61 = vpop.eup %2074  ;;  %2078 = vrcp.f32 %v2753_v53  ;;  %v1025_v62 = vmul.f32 %v2073_v57, %v1015_v49  ;;  %vm1030_vm4 = vweird.f32 %v2073_v57  ;;  %v1093_v35 = vand.u32 2147483647, %v2753_v53 }
 0x2a2   : > { %2080 = vrcp.f32 %v2755_v11  ;;  %v1070_v1 = vmul.f32 %v2075_v61, %v2747_v51  ;;  %vm1031_vm8 = vmor %vm1029_vm2, %vm1030_vm4  ;;  %v1050_v23 = vand.u32 2147483648, %v2755_v11  ;;  %vm1075_vm9 = vweird.f32 %v2075_v61 }
 0x2a3   : > { %v1026_v0 = vsub.f32 1.0, %v1025_v62  ;;  %vm1076_vm11 = vmor %vm1074_vm1, %vm1075_vm9  ;;  %v1095_v36 = vand.u32 2147483648, %v2753_v53  ;;  %v1048_v42 = vand.u32 2147483647, %v2755_v11  ;;  %vm1044_vm15 = vweird.f32 %v2755_v11 }
 0x2a4   : > { %v2077_v2 = vpop.eup %2076  ;;  %v1071_v8 = vsub.f32 1.0, %v1070_v1  ;;  %vm1089_vm1 = vweird.f32 %v2753_v53  ;;  %v1051_v52 = vor.u32 1.1754944e-38, %v1050_v23  ;;  %vm1094_vm4 = vcmp.eq.f32.partialorder %v1093_v35, 8.507059e+37 }
 0x2a5   : > { %v1027_v6 = vmul.f32 %v2073_v57, %v1026_v0  ;;  %v1055_v7 = vmul.f32 %v2077_v2, %v2750_v54  ;;  %vm1060_vm10 = vweird.f32 %v2077_v2  ;;  %v1096_v49 = vor.u32 1.1754944e-38, %v1095_v36 }
 0x2a6   : > { %v918_v9 = vpop.permute.xlu0 %917  ;;  %v1072_v21 = vmul.f32 %v2075_v61, %v1071_v8  ;;  %vm1061_vm14 = vmor %vm1059_vm6, %vm1060_vm10 }
 0x2a7   : > { %v2079_v14 = vpop.eup %2078  ;;  %v948_v15 = vmul.f32 0.5, %v918_v9  ;;  %v1028_v16 = vadd.f32 %v2073_v57, %v1027_v6  ;;  %v1056_v18 = vsub.f32 1.0, %v1055_v7 }
 0x2a8   : > { %v2081_v22 = vpop.eup %2080  ;;  %v1085_v25 = vmul.f32 %v2079_v14, %v2753_v53  ;;  %v1073_v32 = vadd.f32 %v2075_v61, %v1072_v21  ;;  %vm1090_vm12 = vweird.f32 %v2079_v14  ;;  %v942_v21 = vpop.permute.xlu2 %941 }
 0x2a9   : > { %v962_v27 = vmul.f32 1.442695, %v948_v15  ;;  %v1032_v28 = vsel %vm1031_vm8, %v2073_v57, %v1028_v16  ;;  %v1040_v29 = vmul.f32 %v2081_v22, %v2755_v11  ;;  %v1057_v31 = vmul.f32 %v2077_v2, %v1056_v18  ;;  %vm1091_vm2 = vmor %vm1089_vm1, %vm1090_vm12 }
 0x2aa   : > { %v1037_v30 = vsel %vm2770_vm5, %v1036_v13, %v1032_v28  ;;  %v1086_v33 = vsub.f32 1.0, %v1085_v25  ;;  %v1077_v38 = vsel %vm1076_vm11, %v2075_v61, %v1073_v32  ;;  %vm1045_vm13 = vweird.f32 %v2081_v22 }
 0x2ab   : > { %2082 = vpow2.f32 %v962_v27  ;;  %v1041_v34 = vsub.f32 1.0, %v1040_v29  ;;  %1159 = vst [vmem:[%s2786_s14] sm:$0xff] %v1037_v30  ;;  %v1058_v37 = vadd.f32 %v2077_v2, %v1057_v31  ;;  %v1082_v43 = vsel %vm2765_vm3, %v1081_v5, %v1077_v38  ;;  %vm1046_vm3 = vmor %vm1044_vm15, %vm1045_vm13 }
 0x2ac   : > { %v1087_v39 = vmul.f32 %v2079_v14, %v1086_v33  ;;  %1162 = vst [vmem:[%s2786_s14 + $0x18] sm:$0xff] %v1082_v43  ;;  %vm1049_vm5 = vcmp.eq.f32.partialorder %v1048_v42, 8.507059e+37 }
 0x2ad   : > { %v1042_v41 = vmul.f32 %v2081_v22, %v1041_v34  ;;  %v1062_v45 = vsel %vm1061_vm14, %v2077_v2, %v1058_v37 }
 0x2ae   : > { %v920_v44 = vpop.permute.xlu0 %919  ;;  %v1088_v46 = vadd.f32 %v2079_v14, %v1087_v39  ;;  %v1067_v51 = vsel %vm2775_vm7, %v1066_v24, %v1062_v45 }
 0x2af   : > { %v949_v48 = vmul.f32 0.5, %v920_v44  ;;  %v1043_v50 = vadd.f32 %v2081_v22, %v1042_v41  ;;  %1161 = vst [vmem:[%s2786_s14 + $0x10] sm:$0xff] %v1067_v51  ;;  %v1169_v10 = vpack.c.bf16 %v1082_v43, %v1067_v51  ;;  %v1936_v43 = vld [vmem:[#allocation7 + $0x18] sm:$0xff]  ;;  %v1935_v51 = vld [vmem:[#allocation7 + $0x10] sm:$0xff] }
 0x2b0   : > { %v1092_v54 = vsel %vm1091_vm2, %v2079_v14, %v1088_v46  ;;  %1343 = vmatpush.bf16.msrb.mxu2 %v1936_v43 }
 0x2b1   : > { %v2083_v55 = vpop.eup %2082  ;;  %v964_v47 = vmul.f32 1.442695, %v949_v48  ;;  %v1047_v57 = vsel %vm1046_vm3, %v2081_v22, %v1043_v50  ;;  %v2807_v53 = vsel %vm1094_vm4, %v1096_v49, %v1092_v54 }
 0x2b2   : > { %v975_v11 = vmul.f32 %v2083_v55, %v936_v40  ;;  %v1052_v19 = vsel %vm1049_vm5, %v1051_v52, %v1047_v57  ;;  %1163 = vst [vmem:[%s2786_s14 + $0x20] sm:$0xff] %v2807_v53  ;;  %v1934_v57 = vld [vmem:[#allocation7 + $0x8] sm:$0xff] }
 0x2b3   : > { %2084 = vpow2.f32 %v964_v47  ;;  %1160 = vst [vmem:[%s2786_s14 + $0x8] sm:$0xff] %v1052_v19  ;;  %v1168_v60 = vpack.c.bf16 %v1052_v19, %v1037_v30 }
 0x2b4   : > { %v984_v61 = vadd.f32 %v975_v11, %v2686_v17  ;;  %1344 = vmatpush.bf16.msrb.mxu2 %v1935_v51 }
 0x2b5   : > { %1249 = vmatmul.bf16.vlgmr.msrb.gmra.mxu3 %v1168_v60 }
 0x2b6   : > { %v1810_v62 = vmul.f32 -1.442695, %v984_v61  ;;  %v922_v20 = vpop.permute.xlu1 %921  ;;  %v940_v9 = vpop.permute.xlu0 %939 }
 0x2b7   : > { %v950_v26 = vmul.f32 0.5, %v922_v20 }
 0x2b8   : > { %2086 = vpow2.f32 %v1810_v62  ;;  %1345 = vmatpush.bf16.msrb.mxu2 %v1934_v57 }
 0x2b9   : > { %v2085_v0 = vpop.eup %2084  ;;  %v966_v1 = vmul.f32 1.442695, %v950_v26 }
 0x2ba   : > { %v976_v2 = vmul.f32 %v2085_v0, %v938_v63 }
 0x2bb   : > { %2088 = vpow2.f32 %v966_v1 }
 0x2bc   : > { %v985_v3 = vadd.f32 %v976_v2, %v2694_v56 }
 0x2be   : > { %v2087_v4 = vpop.eup %2086  ;;  %v1811_v5 = vmul.f32 -1.442695, %v985_v3  ;;  %v924_v6 = vpop.permute.xlu1 %923 }
 0x2bf   : > { %v1020_v7 = vadd.f32 1.0, %v2087_v4  ;;  %v951_v8 = vmul.f32 0.5, %v924_v6 }
 0x2c0   : > { %2090 = vpow2.f32 %v1811_v5 }
 0x2c1   : > { %v2089_v17 = vpop.eup %2088  ;;  %2092 = vrcp.f32 %v1020_v7  ;;  %v968_v12 = vmul.f32 1.442695, %v951_v8  ;;  %v1110_v27 = vand.u32 2147483648, %v1020_v7  ;;  %v1108_v30 = vand.u32 2147483647, %v1020_v7 }
 0x2c2   : > { %v977_v13 = vmul.f32 %v2089_v17, %v940_v9  ;;  %vm1104_vm7 = vweird.f32 %v1020_v7  ;;  %v1933_v9 = vld [vmem:[#allocation7] sm:$0xff] }
 0x2c3   : > { %2094 = vpow2.f32 %v968_v12  ;;  %v1111_v35 = vor.u32 1.1754944e-38, %v1110_v27  ;;  %vm1109_vm9 = vcmp.eq.f32.partialorder %v1108_v30, 8.507059e+37  ;;  %1346 = vmatpush.bf16.msrb.mxu2 %v1933_v9  ;;  %v2049_v12 = vld [vmem:[%s2961_s8] ss:$0 sm:$0xff] }
 0x2c4   : > { %v986_v14 = vadd.f32 %v977_v13, %v2702_v58 }
 0x2c5   : > { %1254 = vmatmul.bf16.gmra.mxu3 %v1169_v10 }
 0x2c6   : > { %v2091_v15 = vpop.eup %2090  ;;  %v1812_v16 = vmul.f32 -1.442695, %v986_v14 }
 0x2c7   : > { %v2093_v18 = vpop.eup %2092  ;;  %v1021_v56 = vadd.f32 1.0, %v2091_v15 }
 0x2c8   : > { %2096 = vpow2.f32 %v1812_v16  ;;  %v1100_v22 = vmul.f32 %v2093_v18, %v1020_v7  ;;  %vm1105_vm6 = vweird.f32 %v2093_v18 }
 0x2c9   : > { %v2095_v23 = vpop.eup %2094  ;;  %2098 = vrcp.f32 %v1021_v56  ;;  %vm1106_vm8 = vmor %vm1104_vm7, %vm1105_vm6  ;;  %v1125_v40 = vand.u32 2147483648, %v1021_v56  ;;  %v1123_v42 = vand.u32 2147483647, %v1021_v56  ;;  %vm1119_vm11 = vweird.f32 %v1021_v56 }
 0x2ca   : > { %v978_v24 = vmul.f32 %v2095_v23, %v942_v21  ;;  %v1101_v25 = vsub.f32 1.0, %v1100_v22 }
 0x2cb   : > { %v1126_v50 = vor.u32 1.1754944e-38, %v1125_v40  ;;  %vm1124_vm13 = vcmp.eq.f32.partialorder %v1123_v42, 8.507059e+37  ;;  %v1941_v40 = vld [vmem:[%s3013_s25 + $0x20] sm:$0xff] }
 0x2cc   : > { %v987_v28 = vadd.f32 %v978_v24, %v2712_v59  ;;  %v1102_v29 = vmul.f32 %v2093_v18, %v1101_v25 }
 0x2ce   : > { %v2097_v58 = vpop.eup %2096  ;;  %v1813_v31 = vmul.f32 -1.442695, %v987_v28  ;;  %v1103_v32 = vadd.f32 %v2093_v18, %v1102_v29 }
 0x2cf   : > { %v2099_v33 = vpop.eup %2098  ;;  %v1022_v34 = vadd.f32 1.0, %v2097_v58 }
 0x2d0   : > { %2100 = vpow2.f32 %v1813_v31  ;;  %v1107_v36 = vsel %vm1106_vm8, %v2093_v18, %v1103_v32  ;;  %v1115_v37 = vmul.f32 %v2099_v33, %v1021_v56  ;;  %vm1120_vm10 = vweird.f32 %v2099_v33 }
 0x2d1   : > { %2102 = vrcp.f32 %v1022_v34  ;;  %v1112_v38 = vsel %vm1109_vm9, %v1111_v35, %v1107_v36  ;;  %vm1121_vm12 = vmor %vm1119_vm11, %vm1120_vm10  ;;  %v1140_v47 = vand.u32 2147483648, %v1022_v34  ;;  %v1138_v11 = vand.u32 2147483647, %v1022_v34  ;;  %v1943_v36 = vld [vmem:[%s3013_s25 + $0x30] sm:$0xff] }
 0x2d2   : > { %1164 = vst [vmem:[%s2786_s14 + $0x28] sm:$0xff] %v1112_v38  ;;  %v1170_v59 = vpack.c.bf16 %v1112_v38, %v2807_v53  ;;  %v1116_v39 = vsub.f32 1.0, %v1115_v37  ;;  %vm1134_vm15 = vweird.f32 %v1022_v34  ;;  %v1942_v37 = vld [vmem:[%s3013_s25 + $0x28] sm:$0xff] }
 0x2d3   : > { %v1141_v61 = vor.u32 1.1754944e-38, %v1140_v47  ;;  %vm1139_vm2 = vcmp.eq.f32.partialorder %v1138_v11, 8.507059e+37  ;;  %v2050_v47 = vld [vmem:[%s3014_s24] ss:$0 sm:$0xff]  ;;  %s2216_s24 = scalar_lea.hbm %s3016_s10, 288 }
 0x2d4   : > { %v1117_v41 = vmul.f32 %v2099_v33, %v1116_v39  ;;  %p2218_p5 = scmp.lt.s32.totalorder %s2216_s24, %s2212_s23 }
 0x2d5   : > { %1259 = vmatmul.bf16.gmra.mxu3 %v1170_v59 }
 0x2d6   : > { %v2101_v44 = vpop.eup %2100  ;;  %v1118_v45 = vadd.f32 %v2099_v33, %v1117_v41  ;;  %p2219_p7 = por %p2218_p5, %p2217_p3 }
 0x2d7   : > { %v2103_v46 = vpop.eup %2102  ;;  %v1023_v48 = vadd.f32 1.0, %v2101_v44  ;;  %v1940_v44 = vld [vmem:[%s3013_s25 + $0x18] sm:$0xff] }
 0x2d8   : > { %v1122_v49 = vsel %vm1121_vm12, %v2099_v33, %v1118_v45  ;;  %v1130_v52 = vmul.f32 %v2103_v46, %v1022_v34  ;;  %vm1135_vm14 = vweird.f32 %v2103_v46  ;;  %v1944_v34 = vld [vmem:[%s3013_s25 + $0x38] sm:$0xff]  ;;  %p2220_p8 = pnand %p2219_p7, %p2215_p13 }
 0x2d9   : > { %2104 = vrcp.f32 %v1023_v48  ;;  %v1127_v54 = vsel %vm1124_vm13, %v1126_v50, %v1122_v49  ;;  %vm1136_vm1 = vmor %vm1134_vm15, %vm1135_vm14  ;;  %v1155_v1 = vand.u32 2147483648, %v1023_v48  ;;  %v1153_v3 = vand.u32 2147483647, %v1023_v48  ;;  %1454 = vmatpush.bf16.msrb.mxu0 %v1944_v34  ;;  %v1939_v49 = vld [vmem:[%s3013_s25 + $0x10] sm:$0xff] }
 0x2da   : > { %v1131_v55 = vsub.f32 1.0, %v1130_v52  ;;  %1165 = vst [vmem:[%s2786_s14 + $0x30] sm:$0xff] %v1127_v54  ;;  %vm1149_vm4 = vweird.f32 %v1023_v48  ;;  %v1938_v52 = vld [vmem:[%s3013_s25 + $0x8] sm:$0xff] }
 0x2db   : > { %v1156_v5 = vor.u32 1.1754944e-38, %v1155_v1  ;;  %vm1154_vm6 = vcmp.eq.f32.partialorder %v1153_v3, 8.507059e+37 }
 0x2dc   : > { %v1132_v53 = vmul.f32 %v2103_v46, %v1131_v55 }
 0x2dd   : > { %1455 = vmatpush.bf16.msrb.mxu0 %v1943_v36 }
 0x2de   : > { %v1133_v19 = vadd.f32 %v2103_v46, %v1132_v53 }
 0x2df   : > { %v2105_v60 = vpop.eup %2104 }
 0x2e0   : > { %v1137_v62 = vsel %vm1136_vm1, %v2103_v46, %v1133_v19  ;;  %v1145_v20 = vmul.f32 %v2105_v60, %v1023_v48  ;;  %vm1150_vm3 = vweird.f32 %v2105_v60 }
 0x2e1   : > { %v1142_v26 = vsel %vm1139_vm2, %v1141_v61, %v1137_v62  ;;  %vm1151_vm5 = vmor %vm1149_vm4, %vm1150_vm3  ;;  %1456 = vmatpush.bf16.msrb.mxu0 %v1942_v37 }
 0x2e2   : > { %1166 = vst [vmem:[%s2786_s14 + $0x38] sm:$0xff] %v1142_v26  ;;  %v1171_v63 = vpack.c.bf16 %v1142_v26, %v1127_v54  ;;  %v1146_v0 = vsub.f32 1.0, %v1145_v20  ;;  %v1937_v54 = vld [vmem:[%s3013_s25] sm:$0xff] }
 0x2e4   : > { %v1147_v2 = vmul.f32 %v2105_v60, %v1146_v0 }
 0x2e5   : > { %1264 = vmatmul.bf16.gmra.mxu3 %v1171_v63  ;;  %1457 = vmatpush.bf16.msrb.mxu0 %v1941_v40 }
 0x2e6   : > { %v1148_v4 = vadd.f32 %v2105_v60, %v1147_v2 }
 0x2e8   : > { %v1152_v6 = vsel %vm1151_vm5, %v2105_v60, %v1148_v4 }
 0x2e9   : > { %v1157_v7 = vsel %vm1154_vm6, %v1156_v5, %v1152_v6  ;;  %1458 = vmatpush.bf16.msrb.mxu0 %v1940_v44 }
 0x2ea   : > { %1167 = vst [vmem:[%s2786_s14 + $0x40] sm:$0xff] %v1157_v7  ;;  %v1172_v8 = vpack.c.bf16 %v1157_v7, %v1157_v7 }
 0x2ed   : > { %1459 = vmatpush.bf16.msrb.mxu0 %v1939_v49 }
 0x2f1   : > { %1460 = vmatpush.bf16.msrb.mxu0 %v1938_v52 }
 0x2f5   : > { %1269 = vmatmul.bf16.gmra.mxu3 %v1172_v8  ;;  %1461 = vmatpush.bf16.msrb.mxu0 %v1937_v54 }
 0x338   : > { %v1250_v17 = vpop.f32.mrf.mxu3 }
 0x339   : > { %v1251_v13 = vadd.f32 %v2049_v12, %v1250_v17 }
 0x33b   : > { %v1274_v15 = vmax.f32 %v1251_v13, 0.0 }
 0x340   : > { %v1252_v10 = vpop.f32.mrf.mxu3 }
 0x341   : > { %v1253_v14 = vadd.f32 %v2049_v12, %v1252_v10 }
 0x343   : > { %v1275_v16 = vmax.f32 %v1253_v14, 0.0 }
 0x345   : > { %v1283_v18 = vpack.c.bf16 %v1275_v16, %v1274_v15 }
 0x347   : > { %1862 = vmatmul.msk.bf16.vlgmr.msrb.gmra.mxu2 %vm849_vm0, %v1283_v18 }
 0x348   : > { %v1255_v56 = vpop.f32.mrf.mxu3 }
 0x349   : > { %v1256_v21 = vadd.f32 %v2049_v12, %v1255_v56 }
 0x34b   : > { %v1276_v24 = vmax.f32 %v1256_v21, 0.0 }
 0x350   : > { %v1257_v22 = vpop.f32.mrf.mxu3 }
 0x351   : > { %v1258_v23 = vadd.f32 %v2049_v12, %v1257_v22 }
 0x353   : > { %v1277_v25 = vmax.f32 %v1258_v23, 0.0 }
 0x355   : > { %v1284_v27 = vpack.c.bf16 %v1277_v25, %v1276_v24 }
 0x357   : > { %1863 = vmatmul.msk.bf16.gmra.mxu2 %vm849_vm0, %v1284_v27 }
 0x358   : > { %v1260_v28 = vpop.f32.mrf.mxu3 }
 0x359   : > { %v1261_v29 = vadd.f32 %v2049_v12, %v1260_v28 }
 0x35b   : > { %v1278_v31 = vmax.f32 %v1261_v29, 0.0 }
 0x360   : > { %v1262_v30 = vpop.f32.mrf.mxu3 }
 0x361   : > { %v1263_v58 = vadd.f32 %v2049_v12, %v1262_v30 }
 0x363   : > { %v1279_v32 = vmax.f32 %v1263_v58, 0.0 }
 0x365   : > { %v1285_v33 = vpack.c.bf16 %v1279_v32, %v1278_v31 }
 0x367   : > { %1864 = vmatmul.msk.bf16.gmra.mxu2 %vm849_vm0, %v1285_v33 }
 0x368   : > { %v1265_v35 = vpop.f32.mrf.mxu3 }
 0x369   : > { %v1266_v38 = vadd.f32 %v2049_v12, %v1265_v35 }
 0x36b   : > { %v1280_v41 = vmax.f32 %v1266_v38, 0.0 }
 0x370   : > { %v1267_v59 = vpop.f32.mrf.mxu3 }
 0x371   : > { %v1268_v39 = vadd.f32 %v2049_v12, %v1267_v59 }
 0x373   : > { %v1281_v42 = vmax.f32 %v1268_v39, 0.0 }
 0x375   : > { %v1286_v43 = vpack.c.bf16 %v1281_v42, %v1280_v41 }
 0x377   : > { %1865 = vmatmul.msk.bf16.gmra.mxu2 %vm849_vm0, %v1286_v43 }
 0x378   : > { %v1270_v45 = vpop.f32.mrf.mxu3 }
 0x379   : > { %v1271_v46 = vadd.f32 %v2049_v12, %v1270_v45 }
 0x37b   : > { %v1282_v50 = vmax.f32 %v1271_v46, 0.0 }
 0x37d   : > { %v1287_v51 = vpack.c.bf16 %v1282_v50, %v1282_v50 }
 0x380   : > { %v1272_v48 = vpop.f32.mrf.mxu3 }
 0x387   : > { %1866 = vmatmul.msk.bf16.gmra.mxu2 %vm849_vm0, %v1287_v51 }
 0x3ca   : > { %v1348_v55 = vpop.f32.mrf.mxu2 }
 0x3cb   : > { %v1349_v57 = vadd.f32 %v2050_v47, %v1348_v55 }
 0x3cd   : > { %v1372_v19 = vmax.f32 %v1349_v57, 0.0 }
 0x3d2   : > { %v1350_v53 = vpop.f32.mrf.mxu2 }
 0x3d3   : > { %v1351_v11 = vadd.f32 %v2050_v47, %v1350_v53 }
 0x3d5   : > { %v1373_v60 = vmax.f32 %v1351_v11, 0.0 }
 0x3d7   : > { %v1381_v61 = vpack.c.bf16 %v1373_v60, %v1372_v19 }
 0x3d9   : > { %1462 = vmatmul.bf16.vlgmr.msrb.gmra.mxu0 %v1381_v61 }
 0x3da   : > { %v1353_v62 = vpop.f32.mrf.mxu2 }
 0x3db   : > { %v1354_v20 = vadd.f32 %v2050_v47, %v1353_v62 }
 0x3dd   : > { %v1374_v0 = vmax.f32 %v1354_v20, 0.0 }
 0x3e2   : > { %v1355_v26 = vpop.f32.mrf.mxu2 }
 0x3e3   : > { %v1356_v63 = vadd.f32 %v2050_v47, %v1355_v26 }
 0x3e5   : > { %v1375_v1 = vmax.f32 %v1356_v63, 0.0 }
 0x3e7   : > { %v1382_v2 = vpack.c.bf16 %v1375_v1, %v1374_v0 }
 0x3e9   : > { %1467 = vmatmul.bf16.gmra.mxu0 %v1382_v2 }
 0x3ea   : > { %v1358_v3 = vpop.f32.mrf.mxu2 }
 0x3eb   : > { %v1359_v4 = vadd.f32 %v2050_v47, %v1358_v3 }
 0x3ed   : > { %v1376_v7 = vmax.f32 %v1359_v4, 0.0 }
 0x3f2   : > { %v1360_v5 = vpop.f32.mrf.mxu2 }
 0x3f3   : > { %v1361_v6 = vadd.f32 %v2050_v47, %v1360_v5 }
 0x3f5   : > { %v1377_v8 = vmax.f32 %v1361_v6, 0.0 }
 0x3f7   : > { %v1383_v9 = vpack.c.bf16 %v1377_v8, %v1376_v7 }
 0x3f9   : > { %1472 = vmatmul.bf16.gmra.mxu0 %v1383_v9 }
 0x3fa   : > { %v1363_v17 = vpop.f32.mrf.mxu2 }
 0x3fb   : > { %v1364_v12 = vadd.f32 %v2050_v47, %v1363_v17 }
 0x3fd   : > { %v1378_v14 = vmax.f32 %v1364_v12, 0.0 }
 0x402   : > { %v1365_v13 = vpop.f32.mrf.mxu2 }
 0x403   : > { %v1366_v10 = vadd.f32 %v2050_v47, %v1365_v13 }
 0x405   : > { %v1379_v15 = vmax.f32 %v1366_v10, 0.0 }
 0x407   : > { %v1384_v16 = vpack.c.bf16 %v1379_v15, %v1378_v14 }
 0x409   : > { %1477 = vmatmul.bf16.gmra.mxu0 %v1384_v16 }
 0x40a   : > { %v1368_v18 = vpop.f32.mrf.mxu2 }
 0x40b   : > { %v1369_v56 = vadd.f32 %v2050_v47, %v1368_v18 }
 0x40d   : > { %v1380_v22 = vmax.f32 %v1369_v56, 0.0 }
 0x40f   : > { %v1385_v23 = vpack.c.bf16 %v1380_v22, %v1380_v22 }
 0x412   : > { %v1370_v21 = vpop.f32.mrf.mxu2 }
 0x419   : > { %1482 = vmatmul.bf16.gmra.mxu0 %v1385_v23 }
 0x41a   : > { %2223 = shalt.err (!%p2220_p8)
}
 0x41b   : > { %s2335_s14 = smov 128   ;;  %s2336_s26 = smov 8  }
 0x41c   : > { %1973 = dma.vmem_to_hbm [thread:$0]  (%p2471_p11), %s1537_s28, 1152, %s1539_s11, %s2866_s17, %s2335_s14, %s2335_s14, %s2336_s26  }
 0x41d   : > { %s3017_s0 = sld [smem:[#allocation31_spill]] }
 0x423   : > { %s1552_s1 = scalar_lea.hbm %s3017_s0, %s2859_s2  ;;  %s2244_s24 = scalar_lea.hbm %s3017_s0, 288 }
 0x424   : > { %s1555_s30 = sshll.u32 %s1552_s1, 4  ;;  %s1556_s30 = int_to_ptr.hbm [resolvable:$true] %s1555_s30 }
 0x425   : > { %s2238_s16 = sshra.s32 %s1556_s30, 4  ;;  %s2239_s16 = int_to_ptr.hbm [resolvable:$true] %s2238_s16 }
 0x426   : > { %s2240_s23 = scalar_lea.hbm %s2239_s16, 72  ;;  %p2245_p0 = scmp.lt.s32.totalorder %s2239_s16, %s3017_s0 }
 0x427   : > { %p2241_p9 = scmp.ne.s32.totalorder %s2239_s16, %s2240_s23  ;;  %p2246_p2 = scmp.lt.s32.totalorder %s2244_s24, %s2240_s23 }
 0x429   : > { %p2242_p10 = pnand %p2241_p9, %p2471_p11  ;;  %p2247_p4 = por %p2246_p2, %p2245_p0 }
 0x42b   : > { %p2243_p1 = pneg %p2242_p10 }
 0x42d   : > { %p2248_p6 = pnand %p2247_p4, %p2243_p1 }
 0x42f   : > { %2251 = shalt.err (!%p2248_p6)
}
 0x430   : > { %1974 = dma.vmem_to_hbm [thread:$0]  (%p2471_p11), %s1554_s9, 1152, %s1556_s30, %s2866_s17, %s2335_s14, %s2335_s14, %s2336_s26  }
 0x431   : > { %s3018_s13 = sld [smem:[#allocation28_spill]]  ;;  %s2904_s3 = scalar_lea.vmem [#allocation8], %s2521_s18 }
 0x432   : > { %s3019_s17 = sld [smem:[#allocation29_spill]]  ;;  %s1519_s30 = sshll.u32 %s2904_s3, 4  ;;  %s1520_s30 = int_to_ptr.vmem [resolvable:$true] %s1519_s30 }
 0x433   : > { %s1497_s23 = scalar_lea.sflag [#allocation4], %s2518_s27 }
 0x437   : > { %v2051_v24 = vld [vmem:[%s3018_s13] ss:$0 sm:$0xff] }
 0x438   : > { %s1518_s1 = scalar_lea.hbm %s3019_s17, %s2859_s2  ;;  %s2272_s11 = scalar_lea.hbm %s3019_s17, 288 }
 0x439   : > { %s1521_s16 = sshll.u32 %s1518_s1, 4  ;;  %s1522_s16 = int_to_ptr.hbm [resolvable:$true] %s1521_s16 }
 0x43a   : > { %s2266_s15 = sshra.s32 %s1522_s16, 4  ;;  %s2267_s15 = int_to_ptr.hbm [resolvable:$true] %s2266_s15 }
 0x43b   : > { %s2268_s22 = scalar_lea.hbm %s2267_s15, 72  ;;  %p2273_p7 = scmp.lt.s32.totalorder %s2267_s15, %s3019_s17 }
 0x43c   : > { %p2269_p13 = scmp.ne.s32.totalorder %s2267_s15, %s2268_s22  ;;  %p2274_p8 = scmp.lt.s32.totalorder %s2272_s11, %s2268_s22 }
 0x43e   : > { %p2270_p3 = pnand %p2269_p13, %p2471_p11  ;;  %p2275_p9 = por %p2274_p8, %p2273_p7 }
 0x440   : > { %p2271_p5 = pneg %p2270_p3 }
 0x442   : > { %p2276_p10 = pnand %p2275_p9, %p2271_p5 }
 0x456   : > { %v1463_v25 = vpop.f32.mrf.mxu0 }
 0x457   : > { %v1464_v27 = vadd.f32 %v2051_v24, %v1463_v25 }
 0x459   : > { %1487 = vst [vmem:[%s2904_s3] sm:$0xff] %v1464_v27 }
 0x45e   : > { %v1465_v28 = vpop.f32.mrf.mxu0 }
 0x45f   : > { %v1466_v29 = vadd.f32 %v2051_v24, %v1465_v28 }
 0x461   : > { %1488 = vst [vmem:[%s2904_s3 + $0x8] sm:$0xff] %v1466_v29 }
 0x466   : > { %v1468_v30 = vpop.f32.mrf.mxu0 }
 0x467   : > { %v1469_v58 = vadd.f32 %v2051_v24, %v1468_v30 }
 0x469   : > { %1489 = vst [vmem:[%s2904_s3 + $0x10] sm:$0xff] %v1469_v58 }
 0x46e   : > { %v1470_v31 = vpop.f32.mrf.mxu0 }
 0x46f   : > { %v1471_v32 = vadd.f32 %v2051_v24, %v1470_v31 }
 0x471   : > { %1490 = vst [vmem:[%s2904_s3 + $0x18] sm:$0xff] %v1471_v32 }
 0x476   : > { %v1473_v33 = vpop.f32.mrf.mxu0 }
 0x477   : > { %v1474_v34 = vadd.f32 %v2051_v24, %v1473_v33 }
 0x479   : > { %1491 = vst [vmem:[%s2904_s3 + $0x20] sm:$0xff] %v1474_v34 }
 0x47e   : > { %v1475_v35 = vpop.f32.mrf.mxu0 }
 0x47f   : > { %v1476_v36 = vadd.f32 %v2051_v24, %v1475_v35 }
 0x481   : > { %1492 = vst [vmem:[%s2904_s3 + $0x28] sm:$0xff] %v1476_v36 }
 0x486   : > { %v1478_v37 = vpop.f32.mrf.mxu0 }
 0x487   : > { %v1479_v38 = vadd.f32 %v2051_v24, %v1478_v37 }
 0x489   : > { %1493 = vst [vmem:[%s2904_s3 + $0x30] sm:$0xff] %v1479_v38 }
 0x48e   : > { %v1480_v59 = vpop.f32.mrf.mxu0 }
 0x48f   : > { %v1481_v39 = vadd.f32 %v2051_v24, %v1480_v59 }
 0x491   : > { %1494 = vst [vmem:[%s2904_s3 + $0x38] sm:$0xff] %v1481_v39 }
 0x496   : > { %v1483_v40 = vpop.f32.mrf.mxu0 }
 0x497   : > { %v1484_v41 = vadd.f32 %v2051_v24, %v1483_v40 }
 0x499   : > { %1495 = vst [vmem:[%s2904_s3 + $0x40] sm:$0xff] %v1484_v41 }
 0x49a   : > { %2279 = shalt.err (!%p2276_p10)
}
 0x49b   : > { %1972 = dma.vmem_to_hbm [thread:$0]  (%p2471_p11), %s1520_s30, 1152, %s1522_s16, %s1497_s23, %s2335_s14, %s2335_s14, %s2336_s26  }
 0x49e   : > { %v1485_v42 = vpop.f32.mrf.mxu0 }
 0x49f PF: > { %s3020_s27 = sld [smem:[#allocation16_spill]]  ;;  %p2004_p1 = scmp.ge.s32.totalorder %s2326_s21, 2 }
 0x4a1   : > { %p1990_p0 = pnand %p2004_p1, %p2475_p12 }
 0x4a3   : > { %p1991_p2 = pneg %p1990_p0 }
 0x4a5   : > { %s1570_s3 = sand.u32 1, %s3020_s27  }
 0x4a6   : > { %s1571_s18 = scalar_lea.sflag [#allocation4], %s1570_s3 }
 0x4a7   : > { %2305 = dma.done.wait (%p1991_p2), %s1571_s18, 1152  }
 0x4a8   : > { %2307 = vsyncadd (%p1991_p2), %s1571_s18, 4294966144  ;;  %s3022_s9 = sadd.s32 4294967294, %s2326_s21  }
 0x4a9   : > { %s1580_s29 = sand.u32 1, %s3022_s9  }
 0x4aa   : > { %s1581_s1 = scalar_lea.sflag [#allocation10], %s1580_s29 }
 0x4ab   : > { %2309 = dma.done.wait (%p1991_p2), %s1581_s1, 2304  }
 0x4ac   : > { %2311 = vsyncadd (%p1991_p2), %s1581_s1, 4294964992  ;;  %s3023_s21 = sld [smem:[#allocation17_spill]]  ;;  %s3025_s18 = smov %s2318_s19 }
 0x4ad   : > { %s3024_s14 = sld [smem:[#allocation18_spill]]  ;;  %s3026_s19 = smov %s2322_s20 }
 0x4b2   : > { %p33_p11 = scmp.ge.s32.totalorder %s3023_s21, 6  }
 0x4b3   : > { %s3027_s20 = smov %s3024_s14 }
 0x4b4   :  { %35 = sbr.rel (!%p33_p11) target bundleno = 20 (0x14), region = 157 }
 0x4b9   :  { %1597 = vsyncpa [#allocation3], 1 }
 0x4ba   :  { %1599 = vsyncpa [#allocation3 + $0x1], 1 }
 0x4bb   :  { %1600 = vsyncpa [#allocation6], 1 }
 0x4bc   :  { %1601 = vsyncpa [#allocation4], 1 }
 0x4bd   :  { %1603 = vsyncpa [#allocation4 + $0x1], 1 }
 0x4be   :  { %1604 = vsyncpa [#allocation10], 1 }
 0x4bf   :  { %1606 = vsyncpa [#allocation10 + $0x1], 1 }

</bundles_post_ra>
